<compile_context>
chip_gen: v6e
topology: v6e:2x2x1
jax: 0.10.0
libtpu: 0.0.40
codegen_flags: <defaults>
</compile_context>

<pallas_src>
import jax
import jax.numpy as jnp
from jax import lax
from jax.experimental import pallas as pl
from jax.experimental.pallas import tpu as pltpu


def _vmem_limit_bytes():
    """Generation-aware scoped-VMEM request (leave ~25% headroom)."""
    try:
        info = pltpu.get_tpu_info()
        cap = int(getattr(info, "vmem_capacity_bytes", 0) or 0)
        if cap > 0:
            return int(min((cap * 3) // 4, 100 * 1024 * 1024))
    except Exception:
        pass
    return 32 * 1024 * 1024


_VMEM_LIMIT = _vmem_limit_bytes()


def _pick_tile(n, target):
    """Largest divisor of n that is <= target and a multiple of 8 (or n itself)."""
    if n <= target:
        return n
    for t in range(min(target, n), 0, -1):
        if n % t == 0 and (t % 8 == 0 or t == n):
            return t
    # TODO(synk): add a padding / remainder path so prime-ish N or H cannot fall
    # back to a full-size tile and blow past the VMEM budget.
    return n


# ---------------------------------------------------------------------------
# Kernel 1: qkv 1x1 conv == row-tiled matmul, emitting the planar (3, R, C)
# layout so downstream kernels only DMA the planes they actually use.
# ---------------------------------------------------------------------------
def qkv_conv1x1(x_rows, w_pl, b_pl, *, tile_rows=1024):
    """x_rows: (R, Cin); w_pl: (3, Cin, C); b_pl: (3, 1, C). Returns (3, R, C)."""
    R, Cin = x_rows.shape
    C = w_pl.shape[2]
    tr = _pick_tile(R, tile_rows)

    def kernel(x_ref, w_ref, b_ref, o_ref):
        x = x_ref[...].astype(jnp.float32)
        for j in range(3):                                   # q, k, v planes
            acc = jnp.dot(x, w_ref[j], preferred_element_type=jnp.float32)
            o_ref[j] = (acc + b_ref[j]).astype(o_ref.dtype)

    return pl.pallas_call(
        kernel,
        out_shape=jax.ShapeDtypeStruct((3, R, C), jnp.float32),
        grid=(R // tr,),
        in_specs=[
            pl.BlockSpec((tr, Cin), lambda i: (i, 0)),
            pl.BlockSpec((3, Cin, C), lambda i: (0, 0, 0)),   # resident weights
            pl.BlockSpec((3, 1, C), lambda i: (0, 0, 0)),     # resident bias
        ],
        out_specs=pl.BlockSpec((3, tr, C), lambda i: (0, i, 0)),
        compiler_params=pltpu.CompilerParams(
            dimension_semantics=("parallel",),
            vmem_limit_bytes=_VMEM_LIMIT),
    )(x_rows, w_pl, b_pl)


# ---------------------------------------------------------------------------
# Kernel 2: depthwise 3x3 conv (padding=1), planar layout, H-tiled with a
# 1-row halo (no wrapper-side jnp.pad, no full-image VMEM block).
# ---------------------------------------------------------------------------
def dwconv3x3_planar(x, w_tiled, b_tiled, C, *, tile_h=64):
    """x: (3, B, H, W*C); w_tiled: (3, 9, W*C); b_tiled: (3, 1, W*C)."""
    _, B, H, WC = x.shape
    # cap the H tile so (in + out double buffers + shifted copies) fit VMEM
    cap = max(8, (_VMEM_LIMIT // 2) // (32 * WC))
    Ht = _pick_tile(H, min(tile_h, cap))
    nH = H // Ht
    x_rows = x.reshape(3, B * H, 1, WC)          # free row-granular view (halos)

    def kernel(top_ref, mid_ref, bot_ref, w_ref, b_ref, o_ref):
        ht = pl.program_id(2)
        top = top_ref[0, 0].astype(jnp.float32) * (ht > 0).astype(jnp.float32)
        bot = bot_ref[0, 0].astype(jnp.float32) * (ht < nH - 1).astype(jnp.float32)
        mid = mid_ref[0, 0].astype(jnp.float32)                 # (Ht, WC)
        xv = jnp.concatenate([top, mid, bot], axis=0)           # (Ht + 2, WC)
        # dx = 0 / 2 neighbours: shift by one pixel (C lanes), zero at W edges.
        # TODO(synk): try pltpu.roll + lane-iota masks to push the shift to the XLU.
        zc = jnp.zeros((Ht + 2, C), jnp.float32)
        xL = jnp.concatenate([zc, xv[:, :WC - C]], axis=1)
        xR = jnp.concatenate([xv[:, C:], zc], axis=1)
        shifted = (xL, xv, xR)
        acc = jnp.zeros((Ht, WC), jnp.float32)
        for dy in range(3):
            for dx in range(3):
                tap = dy * 3 + dx
                acc = acc + shifted[dx][dy:dy + Ht, :] * w_ref[0, tap:tap + 1, :]
        o_ref[0, 0] = (acc + b_ref[0]).astype(o_ref.dtype)

    return pl.pallas_call(
        kernel,
        out_shape=jax.ShapeDtypeStruct((3, B, H, WC), jnp.float32),
        grid=(3, B, nH),
        in_specs=[
            # top / bottom 1-row halos (row-granular view, clamped at the edges,
            # zero-masked in-kernel)
            pl.BlockSpec((1, 1, 1, WC),
                         lambda j, b, t: (j, b * H + jnp.maximum(t * Ht - 1, 0), 0, 0)),
            pl.BlockSpec((1, 1, Ht, WC), lambda j, b, t: (j, b, t, 0)),
            pl.BlockSpec((1, 1, 1, WC),
                         lambda j, b, t: (j, b * H + jnp.minimum(t * Ht + Ht, H - 1), 0, 0)),
            pl.BlockSpec((1, 9, WC), lambda j, b, t: (j, 0, 0)),   # per-plane weights
            pl.BlockSpec((1, 1, WC), lambda j, b, t: (j, 0, 0)),   # per-plane bias
        ],
        out_specs=pl.BlockSpec((1, 1, Ht, WC), lambda j, b, t: (j, b, t, 0)),
        compiler_params=pltpu.CompilerParams(
            dimension_semantics=("parallel", "parallel", "parallel"),
            vmem_limit_bytes=_VMEM_LIMIT),
    )(x_rows, x, x_rows, w_tiled, b_tiled)
    # TODO(synk): optionally fuse the qkv 1x1 conv into this kernel to drop the
    # (3, B, N, C) HBM intermediate entirely.


# ---------------------------------------------------------------------------
# Kernel 3 (pass A): per-batch q@k^T gram + per-channel sum-of-squares,
# accumulated across N = h*w tiles (reads ONLY the q and k planes).
# ---------------------------------------------------------------------------
def attention_gram(qkv_seq, *, tile_n=512, n_splits=2):
    """qkv_seq: (3, B, N, C) planar.

    Returns partial (gram, sumsq_q, sumsq_k) of shapes (B, S, C, C) and
    (B, S, 1, C); the S split partials (there to keep both v7x TensorCores busy
    even at B == 1) are summed by the caller.
    """
    _, B, N, C = qkv_seq.shape
    tn = _pick_tile(N, tile_n)
    n_tiles = N // tn
    ns = n_splits if (n_tiles >= n_splits and n_tiles % n_splits == 0) else 1
    nN = n_tiles // ns

    def kernel(q_ref, k_ref, gram_ref, sq_ref, sk_ref):
        @pl.when(pl.program_id(2) == 0)
        def _init():
            gram_ref[...] = jnp.zeros_like(gram_ref)
            sq_ref[...] = jnp.zeros_like(sq_ref)
            sk_ref[...] = jnp.zeros_like(sk_ref)

        q = q_ref[0, 0].astype(jnp.float32)                 # (tn, C)
        k = k_ref[0, 0].astype(jnp.float32)                 # (tn, C)
        sq_ref[0, 0] += jnp.sum(q * q, axis=0, keepdims=True)
        sk_ref[0, 0] += jnp.sum(k * k, axis=0, keepdims=True)
        # single full (tn, C) x (tn, C) -> (C, C) MXU push per tile; per-head
        # diagonal blocks are extracted in the tiny wrapper finalize.
        gram_ref[0, 0] += lax.dot_general(
            q, k, (((0,), (0,)), ((), ())),
            preferred_element_type=jnp.float32)

    return pl.pallas_call(
        kernel,
        out_shape=(jax.ShapeDtypeStruct((B, ns, C, C), jnp.float32),
                   jax.ShapeDtypeStruct((B, ns, 1, C), jnp.float32),
                   jax.ShapeDtypeStruct((B, ns, 1, C), jnp.float32)),
        grid=(B, ns, nN),
        in_specs=[
            pl.BlockSpec((1, 1, tn, C), lambda b, s, n: (0, b, s * nN + n, 0)),  # q
            pl.BlockSpec((1, 1, tn, C), lambda b, s, n: (1, b, s * nN + n, 0)),  # k
        ],
        out_specs=(
            pl.BlockSpec((1, 1, C, C), lambda b, s, n: (b, s, 0, 0)),
            pl.BlockSpec((1, 1, 1, C), lambda b, s, n: (b, s, 0, 0)),
            pl.BlockSpec((1, 1, 1, C), lambda b, s, n: (b, s, 0, 0)),
        ),
        compiler_params=pltpu.CompilerParams(
            dimension_semantics=("parallel", "parallel", "arbitrary"),
            vmem_limit_bytes=_VMEM_LIMIT),
    )(qkv_seq, qkv_seq)


# ---------------------------------------------------------------------------
# Kernel 4 (pass B): y = v @ P_b + bias, with the attention matrix pre-folded
# into project_out (reads ONLY the v plane).
# ---------------------------------------------------------------------------
def attention_out_project(qkv_seq, proj, bias, *, tile_n=512):
    """qkv_seq: (3, B, N, C); proj: (B, C, C); bias: (C,). Returns (B, N, C)."""
    _, B, N, C = qkv_seq.shape
    tn = _pick_tile(N, tile_n)

    def kernel(v_ref, p_ref, b_ref, o_ref):
        v = v_ref[0, 0].astype(jnp.float32)                 # (tn, C)
        y = jnp.dot(v, p_ref[0], preferred_element_type=jnp.float32)
        o_ref[0] = (y + b_ref[...]).astype(o_ref.dtype)

    return pl.pallas_call(
        kernel,
        out_shape=jax.ShapeDtypeStruct((B, N, C), jnp.float32),
        grid=(B, N // tn),
        in_specs=[
            pl.BlockSpec((1, 1, tn, C), lambda b, n: (2, b, n, 0)),   # v plane only
            pl.BlockSpec((1, C, C), lambda b, n: (b, 0, 0)),          # per-batch fused P
            pl.BlockSpec((1, C), lambda b, n: (0, 0)),                # resident bias
        ],
        out_specs=pl.BlockSpec((1, tn, C), lambda b, n: (b, n, 0)),
        compiler_params=pltpu.CompilerParams(
            dimension_semantics=("parallel", "parallel"),
            vmem_limit_bytes=_VMEM_LIMIT),
    )(qkv_seq, proj, bias.reshape(1, C))
    # TODO(synk): on v5e, consider a lane-dense (1, tn*C) output slab when
    # tn*C % 128 == 0 to avoid masked partial stores.


# ---------------------------------------------------------------------------
# Full module forward (glue in plain JAX, all N-scale work in Pallas)
# ---------------------------------------------------------------------------
def mdta_attention(x, params, num_heads, *, tile_n=512, tile_rows=1024, tile_h=64):
    b, c, h, w = x.shape
    n = h * w
    ch = c // num_heads

    # single NCHW -> NHWC transpose at the module boundary
    x_rows = jnp.transpose(x, (0, 2, 3, 1)).reshape(b * n, c)

    # 1) qkv 1x1 conv -> planar (3, b*n, c)
    w_pl = jnp.transpose(params["qkv_w"].reshape(3, c, c), (0, 2, 1))   # (3, cin, cout)
    b_pl = params["qkv_b"].reshape(3, 1, c)
    qkv_rows = qkv_conv1x1(x_rows, w_pl, b_pl, tile_rows=tile_rows)

    # 2) depthwise 3x3 conv, planar NHWC, H-tiled with in-kernel halo (no jnp.pad)
    w_tap = jnp.transpose(params["dw_w"].reshape(3, c, 9), (0, 2, 1))   # (3, 9, c)
    w_tiled = jnp.tile(w_tap, (1, 1, w))                                # (3, 9, w*c)
    b_tiled = jnp.tile(params["dw_b"].reshape(3, 1, c), (1, 1, w))      # (3, 1, w*c)
    qkv_img = qkv_rows.reshape(3, b, h, w * c)                          # free reshape
    qkv_dw = dwconv3x3_planar(qkv_img, w_tiled, b_tiled, C=c, tile_h=tile_h)
    qkv_seq = qkv_dw.reshape(3, b, n, c)                                # free reshape

    # 3) pass A: N-tiled gram + sum-of-squares accumulation (q/k planes only)
    gram_p, sq_p, sk_p = attention_gram(qkv_seq, tile_n=tile_n)
    gram = jnp.sum(gram_p, axis=1)                                      # (b, c, c)
    sq = jnp.sum(sq_p, axis=1)[:, 0]                                    # (b, c)
    sk = jnp.sum(sk_p, axis=1)[:, 0]

    # tiny O(b*heads*ch^2) finalize: normalize (exact torch F.normalize
    # semantics), temperature, softmax, then pre-fold attention into project_out.
    eps2 = 1e-24                                                        # (1e-12)**2
    inv_q = lax.rsqrt(jnp.maximum(sq, eps2)).reshape(b, num_heads, ch)
    inv_k = lax.rsqrt(jnp.maximum(sk, eps2)).reshape(b, num_heads, ch)
    gram_h = jnp.stack([gram[:, i * ch:(i + 1) * ch, i * ch:(i + 1) * ch]
                        for i in range(num_heads)], axis=1)             # (b, heads, ch, ch)
    logits = (gram_h * inv_q[..., :, None] * inv_k[..., None, :]
              * params["temperature"].reshape(1, num_heads, 1, 1))
    attn = jax.nn.softmax(logits, axis=-1)

    w_t = params["proj_w"].T                                            # (c, c)
    w_blocks = w_t.reshape(num_heads, ch, c)
    proj = jnp.einsum("bhcd,hco->bhdo", attn, w_blocks).reshape(b, c, c)

    # 4) pass B: out = v @ P_b + bias (attention and project_out fused)
    y_seq = attention_out_project(qkv_seq, proj, params["proj_b"], tile_n=tile_n)

    # single NHWC -> NCHW transpose back to the module interface
    return jnp.transpose(y_seq.reshape(b, h, w, c), (0, 3, 1, 2))


# ---------------------------------------------------------------------------
# Pure-JAX reference (for correctness check)
# ---------------------------------------------------------------------------
def reference(x, params, num_heads):
    b, c, h, w = x.shape
    c_head = c // num_heads
    dn = ("NCHW", "OIHW", "NCHW")

    qkv = lax.conv_general_dilated(
        x, params["qkv_w"].reshape(3 * c, c, 1, 1), (1, 1), "SAME",
        dimension_numbers=dn) + params["qkv_b"].reshape(1, -1, 1, 1)
    qkv = lax.conv_general_dilated(
        qkv, params["dw_w"].reshape(3 * c, 1, 3, 3), (1, 1), "SAME",
        feature_group_count=3 * c,
        dimension_numbers=dn) + params["dw_b"].reshape(1, -1, 1, 1)

    q, k, v = jnp.split(qkv, 3, axis=1)
    q = q.reshape(b, num_heads, c_head, h * w)
    k = k.reshape(b, num_heads, c_head, h * w)
    v = v.reshape(b, num_heads, c_head, h * w)

    eps = 1e-12
    q = q / jnp.maximum(jnp.linalg.norm(q, axis=-1, keepdims=True), eps)
    k = k / jnp.maximum(jnp.linalg.norm(k, axis=-1, keepdims=True), eps)

    attn = jnp.einsum("bhcn,bhdn->bhcd", q, k)
    attn = attn * params["temperature"].reshape(1, num_heads, 1, 1)
    attn = jax.nn.softmax(attn, axis=-1)
    out = jnp.einsum("bhcd,bhdn->bhcn", attn, v).reshape(b, c, h, w)

    out = lax.conv_general_dilated(
        out, params["proj_w"].reshape(c, c, 1, 1), (1, 1), "SAME",
        dimension_numbers=dn) + params["proj_b"].reshape(1, -1, 1, 1)
    return out


if __name__ == "__main__":
    dim, num_heads = 8, 4
    b, h, w = 2, 16, 16

    key = jax.random.PRNGKey(0)
    kx, k1, k2, k3, k4, k5, k6 = jax.random.split(key, 7)

    x = jax.random.normal(kx, (b, dim, h, w), jnp.float32)

    params = {
        # nn.Conv2d(dim, 3*dim, 1): weight (3c, c), bias (3c,)
        "qkv_w": jax.random.normal(k1, (3 * dim, dim), jnp.float32) * 0.1,
        "qkv_b": jax.random.normal(k2, (3 * dim,), jnp.float32) * 0.01,
        # nn.Conv2d(3*dim, 3*dim, 3, groups=3*dim): weight (3c, 3, 3), bias (3c,)
        "dw_w": jax.random.normal(k3, (3 * dim, 3, 3), jnp.float32) * 0.1,
        "dw_b": jax.random.normal(k4, (3 * dim,), jnp.float32) * 0.01,
        # nn.Conv2d(dim, dim, 1): weight (c, c), bias (c,)
        "proj_w": jax.random.normal(k5, (dim, dim), jnp.float32) * 0.1,
        "proj_b": jax.random.normal(k6, (dim,), jnp.float32) * 0.01,
        # nn.Parameter(torch.ones(num_heads, 1, 1))
        "temperature": jnp.ones((num_heads,), jnp.float32),
    }

    y = mdta_attention(x, params, num_heads)
    y = jax.block_until_ready(y)

    y_ref = reference(x, params, num_heads)
    assert y.shape == (b, dim, h, w)
    assert jnp.allclose(y, y_ref, atol=1e-4, rtol=1e-4), (
        float(jnp.max(jnp.abs(y - y_ref))))

    print("KERNEL_OK")
</pallas_src>

<mosaic_0001>
module attributes {stable_mosaic.version = 11 : i64} {
  func.func @kernel(%arg0: i32, %arg1: memref<512x8xf32, #tpu.memory_space<vmem>>, %arg2: memref<3x8x8xf32, #tpu.memory_space<vmem>>, %arg3: memref<3x1x8xf32, #tpu.memory_space<vmem>>, %arg4: memref<3x512x8xf32, #tpu.memory_space<vmem>>) attributes {dimension_semantics = [#tpu.dimension_semantics<parallel>], iteration_bounds = array<i64: 1>, scalar_prefetch = 0 : i64, scratch_operands = 0 : i64, tpu.core_type = #tpu.core_type<tc>, window_params = [{transform_indices = @transform_0, window_bounds = array<i64: 512, 8>}, {pipeline_mode = #tpu.pipeline_mode<synchronous>, transform_indices = @transform_1, window_bounds = array<i64: 3, 8, 8>}, {pipeline_mode = #tpu.pipeline_mode<synchronous>, transform_indices = @transform_2, window_bounds = array<i64: 3, 1, 8>}, {transform_indices = @transform_3, window_bounds = array<i64: 3, 512, 8>}]} {
    %c0 = arith.constant 0 : index
    %c0_0 = arith.constant 0 : index
    %0 = vector.load %arg1[%c0, %c0_0] : memref<512x8xf32, #tpu.memory_space<vmem>>, vector<512x8xf32>
    %c0_1 = arith.constant 0 : index
    %c0_2 = arith.constant 0 : index
    %c0_3 = arith.constant 0 : index
    %1 = vector.load %arg2[%c0_1, %c0_2, %c0_3] : memref<3x8x8xf32, #tpu.memory_space<vmem>>, vector<1x8x8xf32>
    %2 = vector.shape_cast %1 : vector<1x8x8xf32> to vector<8x8xf32>
    %cst = arith.constant dense<0.000000e+00> : vector<512x8xf32>
    %3 = tpu.matmul %0, %2, %cst {dimension_numbers = #tpu.dot_dimension_numbers<[1], [0], [0], [1], [0, 0, 1, 1], [], []>} : vector<512x8xf32>, vector<8x8xf32>, vector<512x8xf32> -> vector<512x8xf32>
    %c0_4 = arith.constant 0 : index
    %c0_5 = arith.constant 0 : index
    %c0_6 = arith.constant 0 : index
    %4 = vector.load %arg3[%c0_4, %c0_5, %c0_6] : memref<3x1x8xf32, #tpu.memory_space<vmem>>, vector<1x1x8xf32>
    %5 = vector.shape_cast %4 : vector<1x1x8xf32> to vector<1x8xf32>
    %6 = vector.broadcast %5 : vector<1x8xf32> to vector<512x8xf32>
    %7 = arith.addf %3, %6 : vector<512x8xf32>
    %c0_7 = arith.constant 0 : index
    %c0_8 = arith.constant 0 : index
    %c0_9 = arith.constant 0 : index
    %8 = vector.load %arg4[%c0_7, %c0_8, %c0_9] : memref<3x512x8xf32, #tpu.memory_space<vmem>>, vector<1x512x8xf32>
    %9 = vector.shape_cast %8 : vector<1x512x8xf32> to vector<512x8xf32>
    %10 = vector.shape_cast %7 : vector<512x8xf32> to vector<1x512x8xf32>
    tpu.vector_store %arg4[%c0_7, %c0_8, %c0_9], %10 {strides = array<i32>} : memref<3x512x8xf32, #tpu.memory_space<vmem>>, vector<1x512x8xf32>,
    %c1 = arith.constant 1 : index
    %c0_10 = arith.constant 0 : index
    %c0_11 = arith.constant 0 : index
    %11 = vector.load %arg2[%c1, %c0_10, %c0_11] : memref<3x8x8xf32, #tpu.memory_space<vmem>>, vector<1x8x8xf32>
    %12 = vector.shape_cast %11 : vector<1x8x8xf32> to vector<8x8xf32>
    %cst_12 = arith.constant dense<0.000000e+00> : vector<512x8xf32>
    %13 = tpu.matmul %0, %12, %cst_12 {dimension_numbers = #tpu.dot_dimension_numbers<[1], [0], [0], [1], [0, 0, 1, 1], [], []>} : vector<512x8xf32>, vector<8x8xf32>, vector<512x8xf32> -> vector<512x8xf32>
    %c1_13 = arith.constant 1 : index
    %c0_14 = arith.constant 0 : index
    %c0_15 = arith.constant 0 : index
    %14 = vector.load %arg3[%c1_13, %c0_14, %c0_15] : memref<3x1x8xf32, #tpu.memory_space<vmem>>, vector<1x1x8xf32>
    %15 = vector.shape_cast %14 : vector<1x1x8xf32> to vector<1x8xf32>
    %16 = vector.broadcast %15 : vector<1x8xf32> to vector<512x8xf32>
    %17 = arith.addf %13, %16 : vector<512x8xf32>
    %c1_16 = arith.constant 1 : index
    %c0_17 = arith.constant 0 : index
    %c0_18 = arith.constant 0 : index
    %18 = vector.load %arg4[%c1_16, %c0_17, %c0_18] : memref<3x512x8xf32, #tpu.memory_space<vmem>>, vector<1x512x8xf32>
    %19 = vector.shape_cast %18 : vector<1x512x8xf32> to vector<512x8xf32>
    %20 = vector.shape_cast %17 : vector<512x8xf32> to vector<1x512x8xf32>
    tpu.vector_store %arg4[%c1_16, %c0_17, %c0_18], %20 {strides = array<i32>} : memref<3x512x8xf32, #tpu.memory_space<vmem>>, vector<1x512x8xf32>,
    %c2 = arith.constant 2 : index
    %c0_19 = arith.constant 0 : index
    %c0_20 = arith.constant 0 : index
    %21 = vector.load %arg2[%c2, %c0_19, %c0_20] : memref<3x8x8xf32, #tpu.memory_space<vmem>>, vector<1x8x8xf32>
    %22 = vector.shape_cast %21 : vector<1x8x8xf32> to vector<8x8xf32>
    %cst_21 = arith.constant dense<0.000000e+00> : vector<512x8xf32>
    %23 = tpu.matmul %0, %22, %cst_21 {dimension_numbers = #tpu.dot_dimension_numbers<[1], [0], [0], [1], [0, 0, 1, 1], [], []>} : vector<512x8xf32>, vector<8x8xf32>, vector<512x8xf32> -> vector<512x8xf32>
    %c2_22 = arith.constant 2 : index
    %c0_23 = arith.constant 0 : index
    %c0_24 = arith.constant 0 : index
    %24 = vector.load %arg3[%c2_22, %c0_23, %c0_24] : memref<3x1x8xf32, #tpu.memory_space<vmem>>, vector<1x1x8xf32>
    %25 = vector.shape_cast %24 : vector<1x1x8xf32> to vector<1x8xf32>
    %26 = vector.broadcast %25 : vector<1x8xf32> to vector<512x8xf32>
    %27 = arith.addf %23, %26 : vector<512x8xf32>
    %c2_25 = arith.constant 2 : index
    %c0_26 = arith.constant 0 : index
    %c0_27 = arith.constant 0 : index
    %28 = vector.load %arg4[%c2_25, %c0_26, %c0_27] : memref<3x512x8xf32, #tpu.memory_space<vmem>>, vector<1x512x8xf32>
    %29 = vector.shape_cast %28 : vector<1x512x8xf32> to vector<512x8xf32>
    %30 = vector.shape_cast %27 : vector<512x8xf32> to vector<1x512x8xf32>
    tpu.vector_store %arg4[%c2_25, %c0_26, %c0_27], %30 {strides = array<i32>} : memref<3x512x8xf32, #tpu.memory_space<vmem>>, vector<1x512x8xf32>,
    return
  }
  func.func @transform_0(%arg0: i32) -> (i32, i32) {
    %c0_i32 = arith.constant 0 : i32
    %c0_i32_0 = arith.constant 0 : i32
    return %arg0, %c0_i32 : i32, i32
  }
  func.func @transform_1(%arg0: i32) -> (i32, i32, i32) {
    %c0_i32 = arith.constant 0 : i32
    %c0_i32_0 = arith.constant 0 : i32
    %c0_i32_1 = arith.constant 0 : i32
    %c0_i32_2 = arith.constant 0 : i32
    return %c0_i32, %c0_i32_0, %c0_i32_1 : i32, i32, i32
  }
  func.func @transform_2(%arg0: i32) -> (i32, i32, i32) {
    %c0_i32 = arith.constant 0 : i32
    %c0_i32_0 = arith.constant 0 : i32
    %c0_i32_1 = arith.constant 0 : i32
    %c0_i32_2 = arith.constant 0 : i32
    return %c0_i32, %c0_i32_0, %c0_i32_1 : i32, i32, i32
  }
  func.func @transform_3(%arg0: i32) -> (i32, i32, i32) {
    %c0_i32 = arith.constant 0 : i32
    %c0_i32_0 = arith.constant 0 : i32
    %c0_i32_1 = arith.constant 0 : i32
    return %c0_i32, %arg0, %c0_i32_0 : i32, i32, i32
  }
}

</mosaic_0001>

<bundles_post_ra>
// kernel: tpu_custom_call.1
= control target key start
LH: loop header
LB: loop body
LE: loop exit
PB: predicated region body
PF: predicated region fallthrough
CT: control target
= control target key end

     0   :  { %vm86_vm0 = vcmask 64512   ;;  %s4178_s1 = inlined_call_operand.vmem [shape: f32[3,8,8], index: 1, kind: input, shape index: {}]   ;;  %s4179_s0 = inlined_call_operand.vmem [shape: f32[512,8], index: 0, kind: input, shape index: {}]   ;;  %s4180_s2 = inlined_call_operand.vmem [shape: f32[3,1,8], index: 2, kind: input, shape index: {}]   ;;  %s4181_s3 = inlined_call_operand.vmem [shape: f32[3,512,8], index: 3, kind: output, shape index: {}]  }
   0x1   :  { %v78_v0 = vld [vmem:[%s4178_s1] sm:$0xff]  ;;  %v2506_v3 = vld [vmem:[%s4179_s0 + $0x8] sm:$0xff]  ;;  %v1848_v6 = vld [vmem:[%s4178_s1 + $0x10] sm:$0xff] }
   0x2   :  { %v2496_v1 = vld [vmem:[%s4179_s0] sm:$0xff]  ;;  %2174 = vmatprep.subr.mxu0 %v78_v0  ;;  %2468 = vmatprep.subr.mxu1 %v78_v0  ;;  %v2511_v4 = vld [vmem:[%s4179_s0 + $0x108] sm:$0xff]  ;;  %v2530_v7 = vld [vmem:[%s4179_s0 + $0x10] sm:$0xff] }
   0x3   :  { %v2501_v2 = vld [vmem:[%s4179_s0 + $0x100] sm:$0xff]  ;;  %2175 = vmatpush3.msra.mxu0 %v78_v0  ;;  %2469 = vmatpush3.msra.mxu1 %v78_v0  ;;  %v1717_v5 = vld [vmem:[%s4178_s1 + $0x8] sm:$0xff]  ;;  %v2535_v8 = vld [vmem:[%s4179_s0 + $0x110] sm:$0xff] }
   0x4   :  { %2176 = vmatprep.mubr.msk.f32.mxu0 %vm86_vm0, %v2496_v1  ;;  %2224 = vmatprep.mubr.msk.f32.mxu1 %vm86_vm0, %v2501_v2  ;;  %v2540_v9 = vld [vmem:[%s4179_s0 + $0x18] sm:$0xff]  ;;  %v2550_v11 = vld [vmem:[%s4179_s0 + $0x20] sm:$0xff]  ;;  %v2572_v13 = vld [vmem:[%s4179_s0 + $0x28] sm:$0xff] }
   0x5   :  { %2177 = vmatmul.mubr.msk.f32.vlgmr.msra.gmra.mxu0 %vm86_vm0, %v2506_v3  ;;  %2225 = vmatmul.mubr.msk.f32.vlgmr.msra.gmra.mxu1 %vm86_vm0, %v2511_v4  ;;  %v2545_v10 = vld [vmem:[%s4179_s0 + $0x118] sm:$0xff]  ;;  %v2555_v12 = vld [vmem:[%s4179_s0 + $0x120] sm:$0xff]  ;;  %v2577_v14 = vld [vmem:[%s4179_s0 + $0x128] sm:$0xff] }
   0x6   :  { %2272 = vmatprep.subr.mxu1 %v1717_v5  ;;  %2370 = vmatprep.subr.mxu0 %v1848_v6  ;;  %v2582_v15 = vld [vmem:[%s4179_s0 + $0x30] sm:$0xff]  ;;  %v2600_v17 = vld [vmem:[%s4179_s0 + $0x38] sm:$0xff]  ;;  %v2610_v19 = vld [vmem:[%s4179_s0 + $0x40] sm:$0xff] }
   0x7   :  { %2273 = vmatpush3.msra.mxu1 %v1717_v5  ;;  %2371 = vmatpush3.msra.mxu0 %v1848_v6  ;;  %v2587_v16 = vld [vmem:[%s4179_s0 + $0x130] sm:$0xff]  ;;  %v2605_v18 = vld [vmem:[%s4179_s0 + $0x138] sm:$0xff]  ;;  %v2615_v20 = vld [vmem:[%s4179_s0 + $0x140] sm:$0xff] }
   0x8   :  { %2179 = vmatprep.mubr.msk.f32.mxu0 %vm86_vm0, %v2530_v7  ;;  %2227 = vmatprep.mubr.msk.f32.mxu1 %vm86_vm0, %v2535_v8  ;;  %v2628_v21 = vld [vmem:[%s4179_s0 + $0x48] sm:$0xff]  ;;  %v2638_v23 = vld [vmem:[%s4179_s0 + $0x50] sm:$0xff]  ;;  %v2656_v25 = vld [vmem:[%s4179_s0 + $0x58] sm:$0xff] }
   0x9   :  { %2180 = vmatmul.mubr.msk.f32.gmra.mxu0 %vm86_vm0, %v2540_v9  ;;  %2228 = vmatmul.mubr.msk.f32.gmra.mxu1 %vm86_vm0, %v2545_v10  ;;  %v2633_v22 = vld [vmem:[%s4179_s0 + $0x148] sm:$0xff]  ;;  %v2643_v24 = vld [vmem:[%s4179_s0 + $0x150] sm:$0xff]  ;;  %v2661_v26 = vld [vmem:[%s4179_s0 + $0x158] sm:$0xff] }
   0xa   :  { %2182 = vmatprep.mubr.msk.f32.mxu0 %vm86_vm0, %v2550_v11  ;;  %2230 = vmatprep.mubr.msk.f32.mxu1 %vm86_vm0, %v2555_v12  ;;  %v2666_v27 = vld [vmem:[%s4179_s0 + $0x60] sm:$0xff]  ;;  %v2684_v29 = vld [vmem:[%s4179_s0 + $0x68] sm:$0xff]  ;;  %v2694_v31 = vld [vmem:[%s4179_s0 + $0x70] sm:$0xff] }
   0xb   :  { %v2671_v28 = vld [vmem:[%s4179_s0 + $0x160] sm:$0xff]  ;;  %v2689_v30 = vld [vmem:[%s4179_s0 + $0x168] sm:$0xff]  ;;  %v2699_v32 = vld [vmem:[%s4179_s0 + $0x170] sm:$0xff] }
   0xc   :  { %v2712_v33 = vld [vmem:[%s4179_s0 + $0x78] sm:$0xff]  ;;  %v2722_v35 = vld [vmem:[%s4179_s0 + $0x80] sm:$0xff]  ;;  %v2740_v37 = vld [vmem:[%s4179_s0 + $0x88] sm:$0xff] }
   0xd   :  { %2183 = vmatmul.mubr.msk.f32.gmra.mxu0 %vm86_vm0, %v2572_v13  ;;  %2231 = vmatmul.mubr.msk.f32.gmra.mxu1 %vm86_vm0, %v2577_v14  ;;  %v2717_v34 = vld [vmem:[%s4179_s0 + $0x178] sm:$0xff]  ;;  %v2727_v36 = vld [vmem:[%s4179_s0 + $0x180] sm:$0xff]  ;;  %v2745_v38 = vld [vmem:[%s4179_s0 + $0x188] sm:$0xff] }
   0xe   :  { %2185 = vmatprep.mubr.msk.f32.mxu0 %vm86_vm0, %v2582_v15  ;;  %2233 = vmatprep.mubr.msk.f32.mxu1 %vm86_vm0, %v2587_v16  ;;  %v2750_v39 = vld [vmem:[%s4179_s0 + $0x90] sm:$0xff]  ;;  %v2768_v41 = vld [vmem:[%s4179_s0 + $0x98] sm:$0xff]  ;;  %v2778_v43 = vld [vmem:[%s4179_s0 + $0xa0] sm:$0xff] }
   0xf   :  { %v2755_v40 = vld [vmem:[%s4179_s0 + $0x190] sm:$0xff]  ;;  %v2773_v42 = vld [vmem:[%s4179_s0 + $0x198] sm:$0xff]  ;;  %v2783_v44 = vld [vmem:[%s4179_s0 + $0x1a0] sm:$0xff] }
  0x10   :  { %v2796_v45 = vld [vmem:[%s4179_s0 + $0xa8] sm:$0xff]  ;;  %v2806_v47 = vld [vmem:[%s4179_s0 + $0xb0] sm:$0xff]  ;;  %v2824_v49 = vld [vmem:[%s4179_s0 + $0xb8] sm:$0xff] }
  0x11   :  { %2186 = vmatmul.mubr.msk.f32.gmra.mxu0 %vm86_vm0, %v2600_v17  ;;  %2234 = vmatmul.mubr.msk.f32.gmra.mxu1 %vm86_vm0, %v2605_v18  ;;  %v2801_v46 = vld [vmem:[%s4179_s0 + $0x1a8] sm:$0xff]  ;;  %v2811_v48 = vld [vmem:[%s4179_s0 + $0x1b0] sm:$0xff]  ;;  %v2829_v50 = vld [vmem:[%s4179_s0 + $0x1b8] sm:$0xff] }
  0x12   :  { %2188 = vmatprep.mubr.msk.f32.mxu0 %vm86_vm0, %v2610_v19  ;;  %2236 = vmatprep.mubr.msk.f32.mxu1 %vm86_vm0, %v2615_v20  ;;  %v2834_v51 = vld [vmem:[%s4179_s0 + $0xc0] sm:$0xff]  ;;  %v2852_v53 = vld [vmem:[%s4179_s0 + $0xc8] sm:$0xff]  ;;  %v2862_v55 = vld [vmem:[%s4179_s0 + $0xd0] sm:$0xff] }
  0x13   :  { %v2839_v52 = vld [vmem:[%s4179_s0 + $0x1c0] sm:$0xff]  ;;  %v2857_v54 = vld [vmem:[%s4179_s0 + $0x1c8] sm:$0xff]  ;;  %v2867_v56 = vld [vmem:[%s4179_s0 + $0x1d0] sm:$0xff] }
  0x14   :  { %v2880_v57 = vld [vmem:[%s4179_s0 + $0xd8] sm:$0xff]  ;;  %v2890_v59 = vld [vmem:[%s4179_s0 + $0xe0] sm:$0xff]  ;;  %v2908_v61 = vld [vmem:[%s4179_s0 + $0xe8] sm:$0xff] }
  0x15   :  { %2189 = vmatmul.mubr.msk.f32.gmra.mxu0 %vm86_vm0, %v2628_v21  ;;  %2237 = vmatmul.mubr.msk.f32.gmra.mxu1 %vm86_vm0, %v2633_v22  ;;  %v2885_v58 = vld [vmem:[%s4179_s0 + $0x1d8] sm:$0xff]  ;;  %v2895_v60 = vld [vmem:[%s4179_s0 + $0x1e0] sm:$0xff]  ;;  %v2913_v62 = vld [vmem:[%s4179_s0 + $0x1e8] sm:$0xff] }
  0x16   :  { %2191 = vmatprep.mubr.msk.f32.mxu0 %vm86_vm0, %v2638_v23  ;;  %2239 = vmatprep.mubr.msk.f32.mxu1 %vm86_vm0, %v2643_v24  ;;  %v2918_v63 = vld [vmem:[%s4179_s0 + $0xf0] sm:$0xff]  ;;  %v2936_v5 = vld [vmem:[%s4179_s0 + $0xf8] sm:$0xff] }
  0x17   :  { %v2923_v0 = vld [vmem:[%s4179_s0 + $0x1f0] sm:$0xff]  ;;  %v2941_v6 = vld [vmem:[%s4179_s0 + $0x1f8] sm:$0xff] }
  0x19   :  { %2192 = vmatmul.mubr.msk.f32.gmra.mxu0 %vm86_vm0, %v2656_v25  ;;  %2240 = vmatmul.mubr.msk.f32.gmra.mxu1 %vm86_vm0, %v2661_v26 }
  0x1a   :  { %2194 = vmatprep.mubr.msk.f32.mxu0 %vm86_vm0, %v2666_v27  ;;  %2242 = vmatprep.mubr.msk.f32.mxu1 %vm86_vm0, %v2671_v28 }
  0x1d   :  { %2195 = vmatmul.mubr.msk.f32.gmra.mxu0 %vm86_vm0, %v2684_v29  ;;  %2243 = vmatmul.mubr.msk.f32.gmra.mxu1 %vm86_vm0, %v2689_v30 }
  0x1e   :  { %2197 = vmatprep.mubr.msk.f32.mxu0 %vm86_vm0, %v2694_v31  ;;  %2245 = vmatprep.mubr.msk.f32.mxu1 %vm86_vm0, %v2699_v32 }
  0x21   :  { %2198 = vmatmul.mubr.msk.f32.gmra.mxu0 %vm86_vm0, %v2712_v33  ;;  %2246 = vmatmul.mubr.msk.f32.gmra.mxu1 %vm86_vm0, %v2717_v34 }
  0x22   :  { %2200 = vmatprep.mubr.msk.f32.mxu0 %vm86_vm0, %v2722_v35  ;;  %2248 = vmatprep.mubr.msk.f32.mxu1 %vm86_vm0, %v2727_v36 }
  0x25   :  { %2201 = vmatmul.mubr.msk.f32.gmra.mxu0 %vm86_vm0, %v2740_v37  ;;  %2249 = vmatmul.mubr.msk.f32.gmra.mxu1 %vm86_vm0, %v2745_v38 }
  0x26   :  { %2203 = vmatprep.mubr.msk.f32.mxu0 %vm86_vm0, %v2750_v39  ;;  %2251 = vmatprep.mubr.msk.f32.mxu1 %vm86_vm0, %v2755_v40 }
  0x29   :  { %2204 = vmatmul.mubr.msk.f32.gmra.mxu0 %vm86_vm0, %v2768_v41  ;;  %2252 = vmatmul.mubr.msk.f32.gmra.mxu1 %vm86_vm0, %v2773_v42 }
  0x2a   :  { %2206 = vmatprep.mubr.msk.f32.mxu0 %vm86_vm0, %v2778_v43  ;;  %2254 = vmatprep.mubr.msk.f32.mxu1 %vm86_vm0, %v2783_v44 }
  0x2d   :  { %2207 = vmatmul.mubr.msk.f32.gmra.mxu0 %vm86_vm0, %v2796_v45  ;;  %2255 = vmatmul.mubr.msk.f32.gmra.mxu1 %vm86_vm0, %v2801_v46 }
  0x2e   :  { %2209 = vmatprep.mubr.msk.f32.mxu0 %vm86_vm0, %v2806_v47  ;;  %2257 = vmatprep.mubr.msk.f32.mxu1 %vm86_vm0, %v2811_v48 }
  0x31   :  { %2210 = vmatmul.mubr.msk.f32.gmra.mxu0 %vm86_vm0, %v2824_v49  ;;  %2258 = vmatmul.mubr.msk.f32.gmra.mxu1 %vm86_vm0, %v2829_v50 }
  0x32   :  { %2212 = vmatprep.mubr.msk.f32.mxu0 %vm86_vm0, %v2834_v51  ;;  %2260 = vmatprep.mubr.msk.f32.mxu1 %vm86_vm0, %v2839_v52 }
  0x35   :  { %2213 = vmatmul.mubr.msk.f32.gmra.mxu0 %vm86_vm0, %v2852_v53  ;;  %2261 = vmatmul.mubr.msk.f32.gmra.mxu1 %vm86_vm0, %v2857_v54 }
  0x36   :  { %2215 = vmatprep.mubr.msk.f32.mxu0 %vm86_vm0, %v2862_v55  ;;  %2263 = vmatprep.mubr.msk.f32.mxu1 %vm86_vm0, %v2867_v56 }
  0x39   :  { %2216 = vmatmul.mubr.msk.f32.gmra.mxu0 %vm86_vm0, %v2880_v57  ;;  %2264 = vmatmul.mubr.msk.f32.gmra.mxu1 %vm86_vm0, %v2885_v58 }
  0x3a   :  { %2218 = vmatprep.mubr.msk.f32.mxu0 %vm86_vm0, %v2890_v59  ;;  %2266 = vmatprep.mubr.msk.f32.mxu1 %vm86_vm0, %v2895_v60 }
  0x3d   :  { %2219 = vmatmul.mubr.msk.f32.gmra.mxu0 %vm86_vm0, %v2908_v61  ;;  %2267 = vmatmul.mubr.msk.f32.gmra.mxu1 %vm86_vm0, %v2913_v62 }
  0x3e   :  { %2221 = vmatprep.mubr.msk.f32.mxu0 %vm86_vm0, %v2918_v63  ;;  %2269 = vmatprep.mubr.msk.f32.mxu1 %vm86_vm0, %v2923_v0 }
  0x41   :  { %2222 = vmatmul.mubr.msk.f32.gmra.mxu0 %vm86_vm0, %v2936_v5  ;;  %2270 = vmatmul.mubr.msk.f32.gmra.mxu1 %vm86_vm0, %v2941_v6 }
  0x42   :  { %2274 = vmatprep.mubr.msk.f32.mxu1 %vm86_vm0, %v2496_v1  ;;  %2372 = vmatprep.mubr.msk.f32.mxu0 %vm86_vm0, %v2496_v1  ;;  %v3206_v1 = vld [vmem:[%s4180_s2] ss:$0 sm:$0xff] }
  0x45   :  { %2275 = vmatmul.mubr.msk.f32.vlgmr.msra.gmra.mxu1 %vm86_vm0, %v2506_v3  ;;  %2373 = vmatmul.mubr.msk.f32.vlgmr.msra.gmra.mxu0 %vm86_vm0, %v2506_v3 }
  0x46   :  { %2277 = vmatprep.mubr.msk.f32.mxu1 %vm86_vm0, %v2530_v7  ;;  %2375 = vmatprep.mubr.msk.f32.mxu0 %vm86_vm0, %v2530_v7 }
  0x49   :  { %2278 = vmatmul.mubr.msk.f32.gmra.mxu1 %vm86_vm0, %v2540_v9  ;;  %2376 = vmatmul.mubr.msk.f32.gmra.mxu0 %vm86_vm0, %v2540_v9 }
  0x4a   :  { %2280 = vmatprep.mubr.msk.f32.mxu1 %vm86_vm0, %v2550_v11  ;;  %2378 = vmatprep.mubr.msk.f32.mxu0 %vm86_vm0, %v2550_v11 }
  0x4d   :  { %2281 = vmatmul.mubr.msk.f32.gmra.mxu1 %vm86_vm0, %v2572_v13  ;;  %2379 = vmatmul.mubr.msk.f32.gmra.mxu0 %vm86_vm0, %v2572_v13 }
  0x4e   :  { %2283 = vmatprep.mubr.msk.f32.mxu1 %vm86_vm0, %v2582_v15  ;;  %2381 = vmatprep.mubr.msk.f32.mxu0 %vm86_vm0, %v2582_v15 }
  0x51   :  { %2284 = vmatmul.mubr.msk.f32.gmra.mxu1 %vm86_vm0, %v2600_v17  ;;  %2382 = vmatmul.mubr.msk.f32.gmra.mxu0 %vm86_vm0, %v2600_v17 }
  0x52   :  { %2286 = vmatprep.mubr.msk.f32.mxu1 %vm86_vm0, %v2610_v19  ;;  %2384 = vmatprep.mubr.msk.f32.mxu0 %vm86_vm0, %v2610_v19 }
  0x55   :  { %2287 = vmatmul.mubr.msk.f32.gmra.mxu1 %vm86_vm0, %v2628_v21  ;;  %2385 = vmatmul.mubr.msk.f32.gmra.mxu0 %vm86_vm0, %v2628_v21 }
  0x56   :  { %2289 = vmatprep.mubr.msk.f32.mxu1 %vm86_vm0, %v2638_v23  ;;  %2387 = vmatprep.mubr.msk.f32.mxu0 %vm86_vm0, %v2638_v23 }
  0x59   :  { %2290 = vmatmul.mubr.msk.f32.gmra.mxu1 %vm86_vm0, %v2656_v25  ;;  %2388 = vmatmul.mubr.msk.f32.gmra.mxu0 %vm86_vm0, %v2656_v25 }
  0x5a   :  { %2292 = vmatprep.mubr.msk.f32.mxu1 %vm86_vm0, %v2666_v27  ;;  %2390 = vmatprep.mubr.msk.f32.mxu0 %vm86_vm0, %v2666_v27 }
  0x5d   :  { %2293 = vmatmul.mubr.msk.f32.gmra.mxu1 %vm86_vm0, %v2684_v29  ;;  %2391 = vmatmul.mubr.msk.f32.gmra.mxu0 %vm86_vm0, %v2684_v29 }
  0x5e   :  { %2295 = vmatprep.mubr.msk.f32.mxu1 %vm86_vm0, %v2694_v31  ;;  %2393 = vmatprep.mubr.msk.f32.mxu0 %vm86_vm0, %v2694_v31 }
  0x61   :  { %2296 = vmatmul.mubr.msk.f32.gmra.mxu1 %vm86_vm0, %v2712_v33  ;;  %2394 = vmatmul.mubr.msk.f32.gmra.mxu0 %vm86_vm0, %v2712_v33 }
  0x62   :  { %2298 = vmatprep.mubr.msk.f32.mxu1 %vm86_vm0, %v2722_v35  ;;  %2396 = vmatprep.mubr.msk.f32.mxu0 %vm86_vm0, %v2722_v35 }
  0x65   :  { %2299 = vmatmul.mubr.msk.f32.gmra.mxu1 %vm86_vm0, %v2740_v37  ;;  %2397 = vmatmul.mubr.msk.f32.gmra.mxu0 %vm86_vm0, %v2740_v37 }
  0x66   :  { %2301 = vmatprep.mubr.msk.f32.mxu1 %vm86_vm0, %v2750_v39  ;;  %2399 = vmatprep.mubr.msk.f32.mxu0 %vm86_vm0, %v2750_v39 }
  0x69   :  { %2302 = vmatmul.mubr.msk.f32.gmra.mxu1 %vm86_vm0, %v2768_v41  ;;  %2400 = vmatmul.mubr.msk.f32.gmra.mxu0 %vm86_vm0, %v2768_v41 }
  0x6a   :  { %2304 = vmatprep.mubr.msk.f32.mxu1 %vm86_vm0, %v2778_v43  ;;  %2402 = vmatprep.mubr.msk.f32.mxu0 %vm86_vm0, %v2778_v43 }
  0x6d   :  { %2305 = vmatmul.mubr.msk.f32.gmra.mxu1 %vm86_vm0, %v2796_v45  ;;  %2403 = vmatmul.mubr.msk.f32.gmra.mxu0 %vm86_vm0, %v2796_v45 }
  0x6e   :  { %2307 = vmatprep.mubr.msk.f32.mxu1 %vm86_vm0, %v2806_v47  ;;  %2405 = vmatprep.mubr.msk.f32.mxu0 %vm86_vm0, %v2806_v47 }
  0x71   :  { %2308 = vmatmul.mubr.msk.f32.gmra.mxu1 %vm86_vm0, %v2824_v49  ;;  %2406 = vmatmul.mubr.msk.f32.gmra.mxu0 %vm86_vm0, %v2824_v49 }
  0x72   :  { %2310 = vmatprep.mubr.msk.f32.mxu1 %vm86_vm0, %v2834_v51  ;;  %2408 = vmatprep.mubr.msk.f32.mxu0 %vm86_vm0, %v2834_v51 }
  0x75   :  { %2311 = vmatmul.mubr.msk.f32.gmra.mxu1 %vm86_vm0, %v2852_v53  ;;  %2409 = vmatmul.mubr.msk.f32.gmra.mxu0 %vm86_vm0, %v2852_v53 }
  0x76   :  { %2313 = vmatprep.mubr.msk.f32.mxu1 %vm86_vm0, %v2862_v55  ;;  %2411 = vmatprep.mubr.msk.f32.mxu0 %vm86_vm0, %v2862_v55 }
  0x79   :  { %2314 = vmatmul.mubr.msk.f32.gmra.mxu1 %vm86_vm0, %v2880_v57  ;;  %2412 = vmatmul.mubr.msk.f32.gmra.mxu0 %vm86_vm0, %v2880_v57 }
  0x7a   :  { %2316 = vmatprep.mubr.msk.f32.mxu1 %vm86_vm0, %v2890_v59  ;;  %2414 = vmatprep.mubr.msk.f32.mxu0 %vm86_vm0, %v2890_v59 }
  0x7d   :  { %2317 = vmatmul.mubr.msk.f32.gmra.mxu1 %vm86_vm0, %v2908_v61  ;;  %2415 = vmatmul.mubr.msk.f32.gmra.mxu0 %vm86_vm0, %v2908_v61 }
  0x7e   :  { %2319 = vmatprep.mubr.msk.f32.mxu1 %vm86_vm0, %v2918_v63  ;;  %2417 = vmatprep.mubr.msk.f32.mxu0 %vm86_vm0, %v2918_v63 }
  0x81   :  { %2320 = vmatmul.mubr.msk.f32.gmra.mxu1 %vm86_vm0, %v2936_v5  ;;  %2418 = vmatmul.mubr.msk.f32.gmra.mxu0 %vm86_vm0, %v2936_v5 }
  0x82   :  { %2322 = vmatprep.mubr.msk.f32.mxu1 %vm86_vm0, %v2501_v2  ;;  %2420 = vmatprep.mubr.msk.f32.mxu0 %vm86_vm0, %v2501_v2 }
  0x85   :  { %2323 = vmatmul.mubr.msk.f32.gmra.mxu1 %vm86_vm0, %v2511_v4  ;;  %2421 = vmatmul.mubr.msk.f32.gmra.mxu0 %vm86_vm0, %v2511_v4 }
  0x86   :  { %2325 = vmatprep.mubr.msk.f32.mxu1 %vm86_vm0, %v2535_v8  ;;  %2423 = vmatprep.mubr.msk.f32.mxu0 %vm86_vm0, %v2535_v8 }
  0x89   :  { %2326 = vmatmul.mubr.msk.f32.gmra.mxu1 %vm86_vm0, %v2545_v10  ;;  %2424 = vmatmul.mubr.msk.f32.gmra.mxu0 %vm86_vm0, %v2545_v10 }
  0x8a   :  { %2328 = vmatprep.mubr.msk.f32.mxu1 %vm86_vm0, %v2555_v12  ;;  %2426 = vmatprep.mubr.msk.f32.mxu0 %vm86_vm0, %v2555_v12 }
  0x8d   :  { %2329 = vmatmul.mubr.msk.f32.gmra.mxu1 %vm86_vm0, %v2577_v14  ;;  %2427 = vmatmul.mubr.msk.f32.gmra.mxu0 %vm86_vm0, %v2577_v14 }
  0x8e   :  { %2331 = vmatprep.mubr.msk.f32.mxu1 %vm86_vm0, %v2587_v16  ;;  %2429 = vmatprep.mubr.msk.f32.mxu0 %vm86_vm0, %v2587_v16 }
  0x91   :  { %2332 = vmatmul.mubr.msk.f32.gmra.mxu1 %vm86_vm0, %v2605_v18  ;;  %2430 = vmatmul.mubr.msk.f32.gmra.mxu0 %vm86_vm0, %v2605_v18 }
  0x92   :  { %2334 = vmatprep.mubr.msk.f32.mxu1 %vm86_vm0, %v2615_v20  ;;  %2432 = vmatprep.mubr.msk.f32.mxu0 %vm86_vm0, %v2615_v20 }
  0x95   :  { %2335 = vmatmul.mubr.msk.f32.gmra.mxu1 %vm86_vm0, %v2633_v22  ;;  %2433 = vmatmul.mubr.msk.f32.gmra.mxu0 %vm86_vm0, %v2633_v22 }
  0x96   :  { %2337 = vmatprep.mubr.msk.f32.mxu1 %vm86_vm0, %v2643_v24  ;;  %2435 = vmatprep.mubr.msk.f32.mxu0 %vm86_vm0, %v2643_v24 }
  0x99   :  { %2338 = vmatmul.mubr.msk.f32.gmra.mxu1 %vm86_vm0, %v2661_v26  ;;  %2436 = vmatmul.mubr.msk.f32.gmra.mxu0 %vm86_vm0, %v2661_v26 }
  0x9a   :  { %2340 = vmatprep.mubr.msk.f32.mxu1 %vm86_vm0, %v2671_v28  ;;  %2438 = vmatprep.mubr.msk.f32.mxu0 %vm86_vm0, %v2671_v28 }
  0x9d   :  { %2341 = vmatmul.mubr.msk.f32.gmra.mxu1 %vm86_vm0, %v2689_v30  ;;  %2439 = vmatmul.mubr.msk.f32.gmra.mxu0 %vm86_vm0, %v2689_v30 }
  0x9e   :  { %2343 = vmatprep.mubr.msk.f32.mxu1 %vm86_vm0, %v2699_v32  ;;  %2441 = vmatprep.mubr.msk.f32.mxu0 %vm86_vm0, %v2699_v32 }
  0xa1   :  { %2344 = vmatmul.mubr.msk.f32.gmra.mxu1 %vm86_vm0, %v2717_v34  ;;  %2442 = vmatmul.mubr.msk.f32.gmra.mxu0 %vm86_vm0, %v2717_v34 }
  0xa2   :  { %2346 = vmatprep.mubr.msk.f32.mxu1 %vm86_vm0, %v2727_v36  ;;  %2444 = vmatprep.mubr.msk.f32.mxu0 %vm86_vm0, %v2727_v36 }
  0xa5   :  { %2347 = vmatmul.mubr.msk.f32.gmra.mxu1 %vm86_vm0, %v2745_v38  ;;  %2445 = vmatmul.mubr.msk.f32.gmra.mxu0 %vm86_vm0, %v2745_v38 }
  0xa6   :  { %2349 = vmatprep.mubr.msk.f32.mxu1 %vm86_vm0, %v2755_v40  ;;  %2447 = vmatprep.mubr.msk.f32.mxu0 %vm86_vm0, %v2755_v40 }
  0xa9   :  { %2350 = vmatmul.mubr.msk.f32.gmra.mxu1 %vm86_vm0, %v2773_v42  ;;  %2448 = vmatmul.mubr.msk.f32.gmra.mxu0 %vm86_vm0, %v2773_v42 }
  0xaa   :  { %2352 = vmatprep.mubr.msk.f32.mxu1 %vm86_vm0, %v2783_v44  ;;  %2450 = vmatprep.mubr.msk.f32.mxu0 %vm86_vm0, %v2783_v44 }
  0xad   :  { %2353 = vmatmul.mubr.msk.f32.gmra.mxu1 %vm86_vm0, %v2801_v46  ;;  %2451 = vmatmul.mubr.msk.f32.gmra.mxu0 %vm86_vm0, %v2801_v46 }
  0xae   :  { %2355 = vmatprep.mubr.msk.f32.mxu1 %vm86_vm0, %v2811_v48  ;;  %2453 = vmatprep.mubr.msk.f32.mxu0 %vm86_vm0, %v2811_v48 }
  0xb1   :  { %2356 = vmatmul.mubr.msk.f32.gmra.mxu1 %vm86_vm0, %v2829_v50  ;;  %2454 = vmatmul.mubr.msk.f32.gmra.mxu0 %vm86_vm0, %v2829_v50 }
  0xb2   :  { %2358 = vmatprep.mubr.msk.f32.mxu1 %vm86_vm0, %v2839_v52  ;;  %2456 = vmatprep.mubr.msk.f32.mxu0 %vm86_vm0, %v2839_v52 }
  0xb5   :  { %2359 = vmatmul.mubr.msk.f32.gmra.mxu1 %vm86_vm0, %v2857_v54  ;;  %2457 = vmatmul.mubr.msk.f32.gmra.mxu0 %vm86_vm0, %v2857_v54 }
  0xb6   :  { %2361 = vmatprep.mubr.msk.f32.mxu1 %vm86_vm0, %v2867_v56  ;;  %2459 = vmatprep.mubr.msk.f32.mxu0 %vm86_vm0, %v2867_v56 }
  0xb9   :  { %2362 = vmatmul.mubr.msk.f32.gmra.mxu1 %vm86_vm0, %v2885_v58  ;;  %2460 = vmatmul.mubr.msk.f32.gmra.mxu0 %vm86_vm0, %v2885_v58 }
  0xba   :  { %2364 = vmatprep.mubr.msk.f32.mxu1 %vm86_vm0, %v2895_v60  ;;  %2462 = vmatprep.mubr.msk.f32.mxu0 %vm86_vm0, %v2895_v60 }
  0xbd   :  { %2365 = vmatmul.mubr.msk.f32.gmra.mxu1 %vm86_vm0, %v2913_v62  ;;  %2463 = vmatmul.mubr.msk.f32.gmra.mxu0 %vm86_vm0, %v2913_v62 }
  0xbe   :  { %2367 = vmatprep.mubr.msk.f32.mxu1 %vm86_vm0, %v2923_v0  ;;  %2465 = vmatprep.mubr.msk.f32.mxu0 %vm86_vm0, %v2923_v0 }
  0xc1   :  { %2368 = vmatmul.mubr.msk.f32.gmra.mxu1 %vm86_vm0, %v2941_v6  ;;  %2466 = vmatmul.mubr.msk.f32.gmra.mxu0 %vm86_vm0, %v2941_v6 }
  0xc5   :  { %v2178_v2 = vpop.f32.mrf.mxu0  ;;  %v2226_v3 = vpop.f32.mrf.mxu1 }
  0xc6   :  { %v351_v4 = vadd.f32 %v2178_v2, %v3206_v1  ;;  %v511_v7 = vadd.f32 %v2226_v3, %v3206_v1 }
  0xc7   :  { %v345_v8 = vpop.f32.mrf.mxu0  ;;  %v505_v9 = vpop.f32.mrf.mxu1 }
  0xc8   :  { %665 = vst.msk [vmem:[%s4181_s3 + $0x8] sm:$0xff] %vm86_vm0, %v351_v4  ;;  %697 = vst.msk [vmem:[%s4181_s3 + $0x108] sm:$0xff] %vm86_vm0, %v511_v7  ;;  %v346_v10 = vadd.f32 %v3206_v1, %v345_v8  ;;  %v506_v11 = vadd.f32 %v3206_v1, %v505_v9 }
  0xc9   :  { %v2181_v12 = vpop.f32.mrf.mxu0  ;;  %v2229_v13 = vpop.f32.mrf.mxu1 }
  0xca   :  { %664 = vst.msk [vmem:[%s4181_s3] sm:$0xff] %vm86_vm0, %v346_v10  ;;  %696 = vst.msk [vmem:[%s4181_s3 + $0x100] sm:$0xff] %vm86_vm0, %v506_v11  ;;  %v361_v14 = vadd.f32 %v2181_v12, %v3206_v1  ;;  %v521_v15 = vadd.f32 %v2229_v13, %v3206_v1 }
  0xcb   :  { %v355_v16 = vpop.f32.mrf.mxu0  ;;  %v515_v17 = vpop.f32.mrf.mxu1 }
  0xcc   :  { %667 = vst.msk [vmem:[%s4181_s3 + $0x18] sm:$0xff] %vm86_vm0, %v361_v14  ;;  %699 = vst.msk [vmem:[%s4181_s3 + $0x118] sm:$0xff] %vm86_vm0, %v521_v15  ;;  %v356_v18 = vadd.f32 %v3206_v1, %v355_v16  ;;  %v516_v19 = vadd.f32 %v3206_v1, %v515_v17 }
  0xcd   :  { %v2184_v20 = vpop.f32.mrf.mxu0  ;;  %v2232_v21 = vpop.f32.mrf.mxu1 }
  0xce   :  { %666 = vst.msk [vmem:[%s4181_s3 + $0x10] sm:$0xff] %vm86_vm0, %v356_v18  ;;  %698 = vst.msk [vmem:[%s4181_s3 + $0x110] sm:$0xff] %vm86_vm0, %v516_v19  ;;  %v371_v22 = vadd.f32 %v2184_v20, %v3206_v1  ;;  %v531_v23 = vadd.f32 %v2232_v21, %v3206_v1 }
  0xcf   :  { %v365_v24 = vpop.f32.mrf.mxu0  ;;  %v525_v25 = vpop.f32.mrf.mxu1 }
  0xd0   :  { %669 = vst.msk [vmem:[%s4181_s3 + $0x28] sm:$0xff] %vm86_vm0, %v371_v22  ;;  %701 = vst.msk [vmem:[%s4181_s3 + $0x128] sm:$0xff] %vm86_vm0, %v531_v23  ;;  %v366_v26 = vadd.f32 %v3206_v1, %v365_v24  ;;  %v526_v27 = vadd.f32 %v3206_v1, %v525_v25 }
  0xd1   :  { %v2187_v28 = vpop.f32.mrf.mxu0  ;;  %v2235_v29 = vpop.f32.mrf.mxu1 }
  0xd2   :  { %668 = vst.msk [vmem:[%s4181_s3 + $0x20] sm:$0xff] %vm86_vm0, %v366_v26  ;;  %700 = vst.msk [vmem:[%s4181_s3 + $0x120] sm:$0xff] %vm86_vm0, %v526_v27  ;;  %v381_v30 = vadd.f32 %v2187_v28, %v3206_v1  ;;  %v541_v31 = vadd.f32 %v2235_v29, %v3206_v1 }
  0xd3   :  { %v375_v32 = vpop.f32.mrf.mxu0  ;;  %v535_v33 = vpop.f32.mrf.mxu1 }
  0xd4   :  { %671 = vst.msk [vmem:[%s4181_s3 + $0x38] sm:$0xff] %vm86_vm0, %v381_v30  ;;  %703 = vst.msk [vmem:[%s4181_s3 + $0x138] sm:$0xff] %vm86_vm0, %v541_v31  ;;  %v376_v34 = vadd.f32 %v3206_v1, %v375_v32  ;;  %v536_v35 = vadd.f32 %v3206_v1, %v535_v33 }
  0xd5   :  { %v2190_v36 = vpop.f32.mrf.mxu0  ;;  %v2238_v37 = vpop.f32.mrf.mxu1 }
  0xd6   :  { %670 = vst.msk [vmem:[%s4181_s3 + $0x30] sm:$0xff] %vm86_vm0, %v376_v34  ;;  %702 = vst.msk [vmem:[%s4181_s3 + $0x130] sm:$0xff] %vm86_vm0, %v536_v35  ;;  %v391_v38 = vadd.f32 %v2190_v36, %v3206_v1  ;;  %v551_v39 = vadd.f32 %v2238_v37, %v3206_v1 }
  0xd7   :  { %v385_v40 = vpop.f32.mrf.mxu0  ;;  %v545_v41 = vpop.f32.mrf.mxu1 }
  0xd8   :  { %673 = vst.msk [vmem:[%s4181_s3 + $0x48] sm:$0xff] %vm86_vm0, %v391_v38  ;;  %705 = vst.msk [vmem:[%s4181_s3 + $0x148] sm:$0xff] %vm86_vm0, %v551_v39  ;;  %v386_v42 = vadd.f32 %v3206_v1, %v385_v40  ;;  %v546_v43 = vadd.f32 %v3206_v1, %v545_v41 }
  0xd9   :  { %v2193_v44 = vpop.f32.mrf.mxu0  ;;  %v2241_v45 = vpop.f32.mrf.mxu1 }
  0xda   :  { %672 = vst.msk [vmem:[%s4181_s3 + $0x40] sm:$0xff] %vm86_vm0, %v386_v42  ;;  %704 = vst.msk [vmem:[%s4181_s3 + $0x140] sm:$0xff] %vm86_vm0, %v546_v43  ;;  %v401_v46 = vadd.f32 %v2193_v44, %v3206_v1  ;;  %v561_v47 = vadd.f32 %v2241_v45, %v3206_v1 }
  0xdb   :  { %v395_v48 = vpop.f32.mrf.mxu0  ;;  %v555_v49 = vpop.f32.mrf.mxu1 }
  0xdc   :  { %675 = vst.msk [vmem:[%s4181_s3 + $0x58] sm:$0xff] %vm86_vm0, %v401_v46  ;;  %707 = vst.msk [vmem:[%s4181_s3 + $0x158] sm:$0xff] %vm86_vm0, %v561_v47  ;;  %v396_v50 = vadd.f32 %v3206_v1, %v395_v48  ;;  %v556_v51 = vadd.f32 %v3206_v1, %v555_v49 }
  0xdd   :  { %v2196_v52 = vpop.f32.mrf.mxu0  ;;  %v2244_v53 = vpop.f32.mrf.mxu1 }
  0xde   :  { %674 = vst.msk [vmem:[%s4181_s3 + $0x50] sm:$0xff] %vm86_vm0, %v396_v50  ;;  %706 = vst.msk [vmem:[%s4181_s3 + $0x150] sm:$0xff] %vm86_vm0, %v556_v51  ;;  %v411_v54 = vadd.f32 %v2196_v52, %v3206_v1  ;;  %v571_v55 = vadd.f32 %v2244_v53, %v3206_v1 }
  0xdf   :  { %v405_v56 = vpop.f32.mrf.mxu0  ;;  %v565_v57 = vpop.f32.mrf.mxu1 }
  0xe0   :  { %677 = vst.msk [vmem:[%s4181_s3 + $0x68] sm:$0xff] %vm86_vm0, %v411_v54  ;;  %709 = vst.msk [vmem:[%s4181_s3 + $0x168] sm:$0xff] %vm86_vm0, %v571_v55  ;;  %v406_v58 = vadd.f32 %v3206_v1, %v405_v56  ;;  %v566_v59 = vadd.f32 %v3206_v1, %v565_v57 }
  0xe1   :  { %v2199_v60 = vpop.f32.mrf.mxu0  ;;  %v2247_v61 = vpop.f32.mrf.mxu1 }
  0xe2   :  { %676 = vst.msk [vmem:[%s4181_s3 + $0x60] sm:$0xff] %vm86_vm0, %v406_v58  ;;  %708 = vst.msk [vmem:[%s4181_s3 + $0x160] sm:$0xff] %vm86_vm0, %v566_v59  ;;  %v421_v62 = vadd.f32 %v2199_v60, %v3206_v1  ;;  %v581_v63 = vadd.f32 %v2247_v61, %v3206_v1 }
  0xe3   :  { %v415_v0 = vpop.f32.mrf.mxu0  ;;  %v575_v5 = vpop.f32.mrf.mxu1 }
  0xe4   :  { %679 = vst.msk [vmem:[%s4181_s3 + $0x78] sm:$0xff] %vm86_vm0, %v421_v62  ;;  %711 = vst.msk [vmem:[%s4181_s3 + $0x178] sm:$0xff] %vm86_vm0, %v581_v63  ;;  %v416_v6 = vadd.f32 %v3206_v1, %v415_v0  ;;  %v576_v2 = vadd.f32 %v3206_v1, %v575_v5 }
  0xe5   :  { %v2202_v3 = vpop.f32.mrf.mxu0  ;;  %v2250_v4 = vpop.f32.mrf.mxu1 }
  0xe6   :  { %678 = vst.msk [vmem:[%s4181_s3 + $0x70] sm:$0xff] %vm86_vm0, %v416_v6  ;;  %710 = vst.msk [vmem:[%s4181_s3 + $0x170] sm:$0xff] %vm86_vm0, %v576_v2  ;;  %v431_v7 = vadd.f32 %v2202_v3, %v3206_v1  ;;  %v591_v8 = vadd.f32 %v2250_v4, %v3206_v1  ;;  %v3513_v2 = vld [vmem:[%s4180_s2 + $0x1] ss:$0 sm:$0xff]  ;;  %v3518_v3 = vld [vmem:[%s4180_s2 + $0x2] ss:$0 sm:$0xff] }
  0xe7   :  { %v425_v9 = vpop.f32.mrf.mxu0  ;;  %v585_v10 = vpop.f32.mrf.mxu1 }
  0xe8   :  { %681 = vst.msk [vmem:[%s4181_s3 + $0x88] sm:$0xff] %vm86_vm0, %v431_v7  ;;  %713 = vst.msk [vmem:[%s4181_s3 + $0x188] sm:$0xff] %vm86_vm0, %v591_v8  ;;  %v426_v11 = vadd.f32 %v3206_v1, %v425_v9  ;;  %v586_v12 = vadd.f32 %v3206_v1, %v585_v10 }
  0xe9   :  { %v2205_v13 = vpop.f32.mrf.mxu0  ;;  %v2253_v14 = vpop.f32.mrf.mxu1 }
  0xea   :  { %680 = vst.msk [vmem:[%s4181_s3 + $0x80] sm:$0xff] %vm86_vm0, %v426_v11  ;;  %712 = vst.msk [vmem:[%s4181_s3 + $0x180] sm:$0xff] %vm86_vm0, %v586_v12  ;;  %v441_v15 = vadd.f32 %v2205_v13, %v3206_v1  ;;  %v601_v16 = vadd.f32 %v2253_v14, %v3206_v1 }
  0xeb   :  { %v435_v17 = vpop.f32.mrf.mxu0  ;;  %v595_v18 = vpop.f32.mrf.mxu1 }
  0xec   :  { %683 = vst.msk [vmem:[%s4181_s3 + $0x98] sm:$0xff] %vm86_vm0, %v441_v15  ;;  %715 = vst.msk [vmem:[%s4181_s3 + $0x198] sm:$0xff] %vm86_vm0, %v601_v16  ;;  %v436_v19 = vadd.f32 %v3206_v1, %v435_v17  ;;  %v596_v20 = vadd.f32 %v3206_v1, %v595_v18 }
  0xed   :  { %v2208_v21 = vpop.f32.mrf.mxu0  ;;  %v2256_v22 = vpop.f32.mrf.mxu1 }
  0xee   :  { %682 = vst.msk [vmem:[%s4181_s3 + $0x90] sm:$0xff] %vm86_vm0, %v436_v19  ;;  %714 = vst.msk [vmem:[%s4181_s3 + $0x190] sm:$0xff] %vm86_vm0, %v596_v20  ;;  %v451_v23 = vadd.f32 %v2208_v21, %v3206_v1  ;;  %v611_v24 = vadd.f32 %v2256_v22, %v3206_v1 }
  0xef   :  { %v445_v25 = vpop.f32.mrf.mxu0  ;;  %v605_v26 = vpop.f32.mrf.mxu1 }
  0xf0   :  { %685 = vst.msk [vmem:[%s4181_s3 + $0xa8] sm:$0xff] %vm86_vm0, %v451_v23  ;;  %717 = vst.msk [vmem:[%s4181_s3 + $0x1a8] sm:$0xff] %vm86_vm0, %v611_v24  ;;  %v446_v27 = vadd.f32 %v3206_v1, %v445_v25  ;;  %v606_v28 = vadd.f32 %v3206_v1, %v605_v26 }
  0xf1   :  { %v2211_v29 = vpop.f32.mrf.mxu0  ;;  %v2259_v30 = vpop.f32.mrf.mxu1 }
  0xf2   :  { %684 = vst.msk [vmem:[%s4181_s3 + $0xa0] sm:$0xff] %vm86_vm0, %v446_v27  ;;  %716 = vst.msk [vmem:[%s4181_s3 + $0x1a0] sm:$0xff] %vm86_vm0, %v606_v28  ;;  %v461_v31 = vadd.f32 %v2211_v29, %v3206_v1  ;;  %v621_v32 = vadd.f32 %v2259_v30, %v3206_v1 }
  0xf3   :  { %v455_v33 = vpop.f32.mrf.mxu0  ;;  %v615_v34 = vpop.f32.mrf.mxu1 }
  0xf4   :  { %687 = vst.msk [vmem:[%s4181_s3 + $0xb8] sm:$0xff] %vm86_vm0, %v461_v31  ;;  %719 = vst.msk [vmem:[%s4181_s3 + $0x1b8] sm:$0xff] %vm86_vm0, %v621_v32  ;;  %v456_v35 = vadd.f32 %v3206_v1, %v455_v33  ;;  %v616_v36 = vadd.f32 %v3206_v1, %v615_v34 }
  0xf5   :  { %v2214_v37 = vpop.f32.mrf.mxu0  ;;  %v2262_v38 = vpop.f32.mrf.mxu1 }
  0xf6   :  { %686 = vst.msk [vmem:[%s4181_s3 + $0xb0] sm:$0xff] %vm86_vm0, %v456_v35  ;;  %718 = vst.msk [vmem:[%s4181_s3 + $0x1b0] sm:$0xff] %vm86_vm0, %v616_v36  ;;  %v471_v39 = vadd.f32 %v2214_v37, %v3206_v1  ;;  %v631_v40 = vadd.f32 %v2262_v38, %v3206_v1 }
  0xf7   :  { %v465_v41 = vpop.f32.mrf.mxu0  ;;  %v625_v42 = vpop.f32.mrf.mxu1 }
  0xf8   :  { %689 = vst.msk [vmem:[%s4181_s3 + $0xc8] sm:$0xff] %vm86_vm0, %v471_v39  ;;  %721 = vst.msk [vmem:[%s4181_s3 + $0x1c8] sm:$0xff] %vm86_vm0, %v631_v40  ;;  %v466_v43 = vadd.f32 %v3206_v1, %v465_v41  ;;  %v626_v44 = vadd.f32 %v3206_v1, %v625_v42 }
  0xf9   :  { %v2217_v45 = vpop.f32.mrf.mxu0  ;;  %v2265_v46 = vpop.f32.mrf.mxu1 }
  0xfa   :  { %688 = vst.msk [vmem:[%s4181_s3 + $0xc0] sm:$0xff] %vm86_vm0, %v466_v43  ;;  %720 = vst.msk [vmem:[%s4181_s3 + $0x1c0] sm:$0xff] %vm86_vm0, %v626_v44  ;;  %v481_v47 = vadd.f32 %v2217_v45, %v3206_v1  ;;  %v641_v48 = vadd.f32 %v2265_v46, %v3206_v1 }
  0xfb   :  { %v475_v49 = vpop.f32.mrf.mxu0  ;;  %v635_v50 = vpop.f32.mrf.mxu1 }
  0xfc   :  { %691 = vst.msk [vmem:[%s4181_s3 + $0xd8] sm:$0xff] %vm86_vm0, %v481_v47  ;;  %723 = vst.msk [vmem:[%s4181_s3 + $0x1d8] sm:$0xff] %vm86_vm0, %v641_v48  ;;  %v476_v51 = vadd.f32 %v3206_v1, %v475_v49  ;;  %v636_v52 = vadd.f32 %v3206_v1, %v635_v50 }
  0xfd   :  { %v2220_v53 = vpop.f32.mrf.mxu0  ;;  %v2268_v54 = vpop.f32.mrf.mxu1 }
  0xfe   :  { %690 = vst.msk [vmem:[%s4181_s3 + $0xd0] sm:$0xff] %vm86_vm0, %v476_v51  ;;  %722 = vst.msk [vmem:[%s4181_s3 + $0x1d0] sm:$0xff] %vm86_vm0, %v636_v52  ;;  %v491_v55 = vadd.f32 %v2220_v53, %v3206_v1  ;;  %v651_v56 = vadd.f32 %v2268_v54, %v3206_v1 }
  0xff   :  { %v485_v57 = vpop.f32.mrf.mxu0  ;;  %v645_v58 = vpop.f32.mrf.mxu1 }
 0x100   :  { %693 = vst.msk [vmem:[%s4181_s3 + $0xe8] sm:$0xff] %vm86_vm0, %v491_v55  ;;  %725 = vst.msk [vmem:[%s4181_s3 + $0x1e8] sm:$0xff] %vm86_vm0, %v651_v56  ;;  %v486_v59 = vadd.f32 %v3206_v1, %v485_v57  ;;  %v646_v60 = vadd.f32 %v3206_v1, %v645_v58 }
 0x101   :  { %v2223_v61 = vpop.f32.mrf.mxu0  ;;  %v2271_v62 = vpop.f32.mrf.mxu1 }
 0x102   :  { %692 = vst.msk [vmem:[%s4181_s3 + $0xe0] sm:$0xff] %vm86_vm0, %v486_v59  ;;  %724 = vst.msk [vmem:[%s4181_s3 + $0x1e0] sm:$0xff] %vm86_vm0, %v646_v60  ;;  %v501_v63 = vadd.f32 %v2223_v61, %v3206_v1  ;;  %v661_v0 = vadd.f32 %v2271_v62, %v3206_v1 }
 0x103   :  { %v495_v5 = vpop.f32.mrf.mxu0  ;;  %v655_v6 = vpop.f32.mrf.mxu1 }
 0x104   :  { %695 = vst.msk [vmem:[%s4181_s3 + $0xf8] sm:$0xff] %vm86_vm0, %v501_v63  ;;  %727 = vst.msk [vmem:[%s4181_s3 + $0x1f8] sm:$0xff] %vm86_vm0, %v661_v0  ;;  %v496_v4 = vadd.f32 %v3206_v1, %v495_v5  ;;  %v656_v7 = vadd.f32 %v3206_v1, %v655_v6 }
 0x105   :  { %v2276_v8 = vpop.f32.mrf.mxu1  ;;  %v2374_v9 = vpop.f32.mrf.mxu0 }
 0x106   :  { %694 = vst.msk [vmem:[%s4181_s3 + $0xf0] sm:$0xff] %vm86_vm0, %v496_v4  ;;  %726 = vst.msk [vmem:[%s4181_s3 + $0x1f0] sm:$0xff] %vm86_vm0, %v656_v7  ;;  %v810_v10 = vadd.f32 %v2276_v8, %v3513_v2  ;;  %v1270_v11 = vadd.f32 %v2374_v9, %v3518_v3 }
 0x107   :  { %v804_v12 = vpop.f32.mrf.mxu1  ;;  %v1264_v13 = vpop.f32.mrf.mxu0 }
 0x108   :  { %1785 = vst.msk [vmem:[%s4181_s3 + $0x208] sm:$0xff] %vm86_vm0, %v810_v10  ;;  %1916 = vst.msk [vmem:[%s4181_s3 + $0x408] sm:$0xff] %vm86_vm0, %v1270_v11  ;;  %v805_v1 = vadd.f32 %v3513_v2, %v804_v12  ;;  %v1265_v14 = vadd.f32 %v3518_v3, %v1264_v13 }
 0x109   :  { %v2279_v15 = vpop.f32.mrf.mxu1  ;;  %v2377_v16 = vpop.f32.mrf.mxu0 }
 0x10a   :  { %1784 = vst.msk [vmem:[%s4181_s3 + $0x200] sm:$0xff] %vm86_vm0, %v805_v1  ;;  %1915 = vst.msk [vmem:[%s4181_s3 + $0x400] sm:$0xff] %vm86_vm0, %v1265_v14  ;;  %v820_v17 = vadd.f32 %v2279_v15, %v3513_v2  ;;  %v1280_v18 = vadd.f32 %v2377_v16, %v3518_v3 }
 0x10b   :  { %v814_v19 = vpop.f32.mrf.mxu1  ;;  %v1274_v20 = vpop.f32.mrf.mxu0 }
 0x10c   :  { %1787 = vst.msk [vmem:[%s4181_s3 + $0x218] sm:$0xff] %vm86_vm0, %v820_v17  ;;  %1918 = vst.msk [vmem:[%s4181_s3 + $0x418] sm:$0xff] %vm86_vm0, %v1280_v18  ;;  %v815_v21 = vadd.f32 %v3513_v2, %v814_v19  ;;  %v1275_v22 = vadd.f32 %v3518_v3, %v1274_v20 }
 0x10d   :  { %v2282_v23 = vpop.f32.mrf.mxu1  ;;  %v2380_v24 = vpop.f32.mrf.mxu0 }
 0x10e   :  { %1786 = vst.msk [vmem:[%s4181_s3 + $0x210] sm:$0xff] %vm86_vm0, %v815_v21  ;;  %1917 = vst.msk [vmem:[%s4181_s3 + $0x410] sm:$0xff] %vm86_vm0, %v1275_v22  ;;  %v830_v25 = vadd.f32 %v2282_v23, %v3513_v2  ;;  %v1290_v26 = vadd.f32 %v2380_v24, %v3518_v3 }
 0x10f   :  { %v824_v27 = vpop.f32.mrf.mxu1  ;;  %v1284_v28 = vpop.f32.mrf.mxu0 }
 0x110   :  { %1789 = vst.msk [vmem:[%s4181_s3 + $0x228] sm:$0xff] %vm86_vm0, %v830_v25  ;;  %1920 = vst.msk [vmem:[%s4181_s3 + $0x428] sm:$0xff] %vm86_vm0, %v1290_v26  ;;  %v825_v29 = vadd.f32 %v3513_v2, %v824_v27  ;;  %v1285_v30 = vadd.f32 %v3518_v3, %v1284_v28 }
 0x111   :  { %v2285_v31 = vpop.f32.mrf.mxu1  ;;  %v2383_v32 = vpop.f32.mrf.mxu0 }
 0x112   :  { %1788 = vst.msk [vmem:[%s4181_s3 + $0x220] sm:$0xff] %vm86_vm0, %v825_v29  ;;  %1919 = vst.msk [vmem:[%s4181_s3 + $0x420] sm:$0xff] %vm86_vm0, %v1285_v30  ;;  %v840_v33 = vadd.f32 %v2285_v31, %v3513_v2  ;;  %v1300_v34 = vadd.f32 %v2383_v32, %v3518_v3 }
 0x113   :  { %v834_v35 = vpop.f32.mrf.mxu1  ;;  %v1294_v36 = vpop.f32.mrf.mxu0 }
 0x114   :  { %1791 = vst.msk [vmem:[%s4181_s3 + $0x238] sm:$0xff] %vm86_vm0, %v840_v33  ;;  %1922 = vst.msk [vmem:[%s4181_s3 + $0x438] sm:$0xff] %vm86_vm0, %v1300_v34  ;;  %v835_v37 = vadd.f32 %v3513_v2, %v834_v35  ;;  %v1295_v38 = vadd.f32 %v3518_v3, %v1294_v36 }
 0x115   :  { %v2288_v39 = vpop.f32.mrf.mxu1  ;;  %v2386_v40 = vpop.f32.mrf.mxu0 }
 0x116   :  { %1790 = vst.msk [vmem:[%s4181_s3 + $0x230] sm:$0xff] %vm86_vm0, %v835_v37  ;;  %1921 = vst.msk [vmem:[%s4181_s3 + $0x430] sm:$0xff] %vm86_vm0, %v1295_v38  ;;  %v850_v41 = vadd.f32 %v2288_v39, %v3513_v2  ;;  %v1310_v42 = vadd.f32 %v2386_v40, %v3518_v3 }
 0x117   :  { %v844_v43 = vpop.f32.mrf.mxu1  ;;  %v1304_v44 = vpop.f32.mrf.mxu0 }
 0x118   :  { %1793 = vst.msk [vmem:[%s4181_s3 + $0x248] sm:$0xff] %vm86_vm0, %v850_v41  ;;  %1924 = vst.msk [vmem:[%s4181_s3 + $0x448] sm:$0xff] %vm86_vm0, %v1310_v42  ;;  %v845_v45 = vadd.f32 %v3513_v2, %v844_v43  ;;  %v1305_v46 = vadd.f32 %v3518_v3, %v1304_v44 }
 0x119   :  { %v2291_v47 = vpop.f32.mrf.mxu1  ;;  %v2389_v48 = vpop.f32.mrf.mxu0 }
 0x11a   :  { %1792 = vst.msk [vmem:[%s4181_s3 + $0x240] sm:$0xff] %vm86_vm0, %v845_v45  ;;  %1923 = vst.msk [vmem:[%s4181_s3 + $0x440] sm:$0xff] %vm86_vm0, %v1305_v46  ;;  %v860_v49 = vadd.f32 %v2291_v47, %v3513_v2  ;;  %v1320_v50 = vadd.f32 %v2389_v48, %v3518_v3 }
 0x11b   :  { %v854_v51 = vpop.f32.mrf.mxu1  ;;  %v1314_v52 = vpop.f32.mrf.mxu0 }
 0x11c   :  { %1795 = vst.msk [vmem:[%s4181_s3 + $0x258] sm:$0xff] %vm86_vm0, %v860_v49  ;;  %1926 = vst.msk [vmem:[%s4181_s3 + $0x458] sm:$0xff] %vm86_vm0, %v1320_v50  ;;  %v855_v53 = vadd.f32 %v3513_v2, %v854_v51  ;;  %v1315_v54 = vadd.f32 %v3518_v3, %v1314_v52 }
 0x11d   :  { %v2294_v55 = vpop.f32.mrf.mxu1  ;;  %v2392_v56 = vpop.f32.mrf.mxu0 }
 0x11e   :  { %1794 = vst.msk [vmem:[%s4181_s3 + $0x250] sm:$0xff] %vm86_vm0, %v855_v53  ;;  %1925 = vst.msk [vmem:[%s4181_s3 + $0x450] sm:$0xff] %vm86_vm0, %v1315_v54  ;;  %v870_v57 = vadd.f32 %v2294_v55, %v3513_v2  ;;  %v1330_v58 = vadd.f32 %v2392_v56, %v3518_v3 }
 0x11f   :  { %v864_v59 = vpop.f32.mrf.mxu1  ;;  %v1324_v60 = vpop.f32.mrf.mxu0 }
 0x120   :  { %1797 = vst.msk [vmem:[%s4181_s3 + $0x268] sm:$0xff] %vm86_vm0, %v870_v57  ;;  %1928 = vst.msk [vmem:[%s4181_s3 + $0x468] sm:$0xff] %vm86_vm0, %v1330_v58  ;;  %v865_v61 = vadd.f32 %v3513_v2, %v864_v59  ;;  %v1325_v62 = vadd.f32 %v3518_v3, %v1324_v60 }
 0x121   :  { %v2297_v63 = vpop.f32.mrf.mxu1  ;;  %v2395_v0 = vpop.f32.mrf.mxu0 }
 0x122   :  { %1796 = vst.msk [vmem:[%s4181_s3 + $0x260] sm:$0xff] %vm86_vm0, %v865_v61  ;;  %1927 = vst.msk [vmem:[%s4181_s3 + $0x460] sm:$0xff] %vm86_vm0, %v1325_v62  ;;  %v880_v5 = vadd.f32 %v2297_v63, %v3513_v2  ;;  %v1340_v6 = vadd.f32 %v2395_v0, %v3518_v3 }
 0x123   :  { %v874_v4 = vpop.f32.mrf.mxu1  ;;  %v1334_v7 = vpop.f32.mrf.mxu0 }
 0x124   :  { %1799 = vst.msk [vmem:[%s4181_s3 + $0x278] sm:$0xff] %vm86_vm0, %v880_v5  ;;  %1930 = vst.msk [vmem:[%s4181_s3 + $0x478] sm:$0xff] %vm86_vm0, %v1340_v6  ;;  %v875_v8 = vadd.f32 %v3513_v2, %v874_v4  ;;  %v1335_v9 = vadd.f32 %v3518_v3, %v1334_v7 }
 0x125   :  { %v2300_v10 = vpop.f32.mrf.mxu1  ;;  %v2398_v11 = vpop.f32.mrf.mxu0 }
 0x126   :  { %1798 = vst.msk [vmem:[%s4181_s3 + $0x270] sm:$0xff] %vm86_vm0, %v875_v8  ;;  %1929 = vst.msk [vmem:[%s4181_s3 + $0x470] sm:$0xff] %vm86_vm0, %v1335_v9  ;;  %v890_v12 = vadd.f32 %v2300_v10, %v3513_v2  ;;  %v1350_v13 = vadd.f32 %v2398_v11, %v3518_v3 }
 0x127   :  { %v884_v1 = vpop.f32.mrf.mxu1  ;;  %v1344_v14 = vpop.f32.mrf.mxu0 }
 0x128   :  { %1801 = vst.msk [vmem:[%s4181_s3 + $0x288] sm:$0xff] %vm86_vm0, %v890_v12  ;;  %1932 = vst.msk [vmem:[%s4181_s3 + $0x488] sm:$0xff] %vm86_vm0, %v1350_v13  ;;  %v885_v15 = vadd.f32 %v3513_v2, %v884_v1  ;;  %v1345_v16 = vadd.f32 %v3518_v3, %v1344_v14 }
 0x129   :  { %v2303_v17 = vpop.f32.mrf.mxu1  ;;  %v2401_v18 = vpop.f32.mrf.mxu0 }
 0x12a   :  { %1800 = vst.msk [vmem:[%s4181_s3 + $0x280] sm:$0xff] %vm86_vm0, %v885_v15  ;;  %1931 = vst.msk [vmem:[%s4181_s3 + $0x480] sm:$0xff] %vm86_vm0, %v1345_v16  ;;  %v900_v19 = vadd.f32 %v2303_v17, %v3513_v2  ;;  %v1360_v20 = vadd.f32 %v2401_v18, %v3518_v3 }
 0x12b   :  { %v894_v21 = vpop.f32.mrf.mxu1  ;;  %v1354_v22 = vpop.f32.mrf.mxu0 }
 0x12c   :  { %1803 = vst.msk [vmem:[%s4181_s3 + $0x298] sm:$0xff] %vm86_vm0, %v900_v19  ;;  %1934 = vst.msk [vmem:[%s4181_s3 + $0x498] sm:$0xff] %vm86_vm0, %v1360_v20  ;;  %v895_v23 = vadd.f32 %v3513_v2, %v894_v21  ;;  %v1355_v24 = vadd.f32 %v3518_v3, %v1354_v22 }
 0x12d   :  { %v2306_v25 = vpop.f32.mrf.mxu1  ;;  %v2404_v26 = vpop.f32.mrf.mxu0 }
 0x12e   :  { %1802 = vst.msk [vmem:[%s4181_s3 + $0x290] sm:$0xff] %vm86_vm0, %v895_v23  ;;  %1933 = vst.msk [vmem:[%s4181_s3 + $0x490] sm:$0xff] %vm86_vm0, %v1355_v24  ;;  %v910_v27 = vadd.f32 %v2306_v25, %v3513_v2  ;;  %v1370_v28 = vadd.f32 %v2404_v26, %v3518_v3 }
 0x12f   :  { %v904_v29 = vpop.f32.mrf.mxu1  ;;  %v1364_v30 = vpop.f32.mrf.mxu0 }
 0x130   :  { %1805 = vst.msk [vmem:[%s4181_s3 + $0x2a8] sm:$0xff] %vm86_vm0, %v910_v27  ;;  %1936 = vst.msk [vmem:[%s4181_s3 + $0x4a8] sm:$0xff] %vm86_vm0, %v1370_v28  ;;  %v905_v31 = vadd.f32 %v3513_v2, %v904_v29  ;;  %v1365_v32 = vadd.f32 %v3518_v3, %v1364_v30 }
 0x131   :  { %v2309_v33 = vpop.f32.mrf.mxu1  ;;  %v2407_v34 = vpop.f32.mrf.mxu0 }
 0x132   :  { %1804 = vst.msk [vmem:[%s4181_s3 + $0x2a0] sm:$0xff] %vm86_vm0, %v905_v31  ;;  %1935 = vst.msk [vmem:[%s4181_s3 + $0x4a0] sm:$0xff] %vm86_vm0, %v1365_v32  ;;  %v920_v35 = vadd.f32 %v2309_v33, %v3513_v2  ;;  %v1380_v36 = vadd.f32 %v2407_v34, %v3518_v3 }
 0x133   :  { %v914_v37 = vpop.f32.mrf.mxu1  ;;  %v1374_v38 = vpop.f32.mrf.mxu0 }
 0x134   :  { %1807 = vst.msk [vmem:[%s4181_s3 + $0x2b8] sm:$0xff] %vm86_vm0, %v920_v35  ;;  %1938 = vst.msk [vmem:[%s4181_s3 + $0x4b8] sm:$0xff] %vm86_vm0, %v1380_v36  ;;  %v915_v39 = vadd.f32 %v3513_v2, %v914_v37  ;;  %v1375_v40 = vadd.f32 %v3518_v3, %v1374_v38 }
 0x135   :  { %v2312_v41 = vpop.f32.mrf.mxu1  ;;  %v2410_v42 = vpop.f32.mrf.mxu0 }
 0x136   :  { %1806 = vst.msk [vmem:[%s4181_s3 + $0x2b0] sm:$0xff] %vm86_vm0, %v915_v39  ;;  %1937 = vst.msk [vmem:[%s4181_s3 + $0x4b0] sm:$0xff] %vm86_vm0, %v1375_v40  ;;  %v930_v43 = vadd.f32 %v2312_v41, %v3513_v2  ;;  %v1390_v44 = vadd.f32 %v2410_v42, %v3518_v3 }
 0x137   :  { %v924_v45 = vpop.f32.mrf.mxu1  ;;  %v1384_v46 = vpop.f32.mrf.mxu0 }
 0x138   :  { %1809 = vst.msk [vmem:[%s4181_s3 + $0x2c8] sm:$0xff] %vm86_vm0, %v930_v43  ;;  %1940 = vst.msk [vmem:[%s4181_s3 + $0x4c8] sm:$0xff] %vm86_vm0, %v1390_v44  ;;  %v925_v47 = vadd.f32 %v3513_v2, %v924_v45  ;;  %v1385_v48 = vadd.f32 %v3518_v3, %v1384_v46 }
 0x139   :  { %v2315_v49 = vpop.f32.mrf.mxu1  ;;  %v2413_v50 = vpop.f32.mrf.mxu0 }
 0x13a   :  { %1808 = vst.msk [vmem:[%s4181_s3 + $0x2c0] sm:$0xff] %vm86_vm0, %v925_v47  ;;  %1939 = vst.msk [vmem:[%s4181_s3 + $0x4c0] sm:$0xff] %vm86_vm0, %v1385_v48  ;;  %v940_v51 = vadd.f32 %v2315_v49, %v3513_v2  ;;  %v1400_v52 = vadd.f32 %v2413_v50, %v3518_v3 }
 0x13b   :  { %v934_v53 = vpop.f32.mrf.mxu1  ;;  %v1394_v54 = vpop.f32.mrf.mxu0 }
 0x13c   :  { %1811 = vst.msk [vmem:[%s4181_s3 + $0x2d8] sm:$0xff] %vm86_vm0, %v940_v51  ;;  %1942 = vst.msk [vmem:[%s4181_s3 + $0x4d8] sm:$0xff] %vm86_vm0, %v1400_v52  ;;  %v935_v55 = vadd.f32 %v3513_v2, %v934_v53  ;;  %v1395_v56 = vadd.f32 %v3518_v3, %v1394_v54 }
 0x13d   :  { %v2318_v57 = vpop.f32.mrf.mxu1  ;;  %v2416_v58 = vpop.f32.mrf.mxu0 }
 0x13e   :  { %1810 = vst.msk [vmem:[%s4181_s3 + $0x2d0] sm:$0xff] %vm86_vm0, %v935_v55  ;;  %1941 = vst.msk [vmem:[%s4181_s3 + $0x4d0] sm:$0xff] %vm86_vm0, %v1395_v56  ;;  %v950_v59 = vadd.f32 %v2318_v57, %v3513_v2  ;;  %v1410_v60 = vadd.f32 %v2416_v58, %v3518_v3 }
 0x13f   :  { %v944_v61 = vpop.f32.mrf.mxu1  ;;  %v1404_v62 = vpop.f32.mrf.mxu0 }
 0x140   :  { %1813 = vst.msk [vmem:[%s4181_s3 + $0x2e8] sm:$0xff] %vm86_vm0, %v950_v59  ;;  %1944 = vst.msk [vmem:[%s4181_s3 + $0x4e8] sm:$0xff] %vm86_vm0, %v1410_v60  ;;  %v945_v63 = vadd.f32 %v3513_v2, %v944_v61  ;;  %v1405_v0 = vadd.f32 %v3518_v3, %v1404_v62 }
 0x141   :  { %v2321_v5 = vpop.f32.mrf.mxu1  ;;  %v2419_v6 = vpop.f32.mrf.mxu0 }
 0x142   :  { %1812 = vst.msk [vmem:[%s4181_s3 + $0x2e0] sm:$0xff] %vm86_vm0, %v945_v63  ;;  %1943 = vst.msk [vmem:[%s4181_s3 + $0x4e0] sm:$0xff] %vm86_vm0, %v1405_v0  ;;  %v960_v4 = vadd.f32 %v2321_v5, %v3513_v2  ;;  %v1420_v7 = vadd.f32 %v2419_v6, %v3518_v3 }
 0x143   :  { %v954_v8 = vpop.f32.mrf.mxu1  ;;  %v1414_v9 = vpop.f32.mrf.mxu0 }
 0x144   :  { %1815 = vst.msk [vmem:[%s4181_s3 + $0x2f8] sm:$0xff] %vm86_vm0, %v960_v4  ;;  %1946 = vst.msk [vmem:[%s4181_s3 + $0x4f8] sm:$0xff] %vm86_vm0, %v1420_v7  ;;  %v955_v10 = vadd.f32 %v3513_v2, %v954_v8  ;;  %v1415_v11 = vadd.f32 %v3518_v3, %v1414_v9 }
 0x145   :  { %v2324_v12 = vpop.f32.mrf.mxu1  ;;  %v2422_v13 = vpop.f32.mrf.mxu0 }
 0x146   :  { %1814 = vst.msk [vmem:[%s4181_s3 + $0x2f0] sm:$0xff] %vm86_vm0, %v955_v10  ;;  %1945 = vst.msk [vmem:[%s4181_s3 + $0x4f0] sm:$0xff] %vm86_vm0, %v1415_v11  ;;  %v970_v1 = vadd.f32 %v2324_v12, %v3513_v2  ;;  %v1430_v14 = vadd.f32 %v2422_v13, %v3518_v3 }
 0x147   :  { %v964_v15 = vpop.f32.mrf.mxu1  ;;  %v1424_v16 = vpop.f32.mrf.mxu0 }
 0x148   :  { %1817 = vst.msk [vmem:[%s4181_s3 + $0x308] sm:$0xff] %vm86_vm0, %v970_v1  ;;  %1948 = vst.msk [vmem:[%s4181_s3 + $0x508] sm:$0xff] %vm86_vm0, %v1430_v14  ;;  %v965_v17 = vadd.f32 %v3513_v2, %v964_v15  ;;  %v1425_v18 = vadd.f32 %v3518_v3, %v1424_v16 }
 0x149   :  { %v2327_v19 = vpop.f32.mrf.mxu1  ;;  %v2425_v20 = vpop.f32.mrf.mxu0 }
 0x14a   :  { %1816 = vst.msk [vmem:[%s4181_s3 + $0x300] sm:$0xff] %vm86_vm0, %v965_v17  ;;  %1947 = vst.msk [vmem:[%s4181_s3 + $0x500] sm:$0xff] %vm86_vm0, %v1425_v18  ;;  %v980_v21 = vadd.f32 %v2327_v19, %v3513_v2  ;;  %v1440_v22 = vadd.f32 %v2425_v20, %v3518_v3 }
 0x14b   :  { %v974_v23 = vpop.f32.mrf.mxu1  ;;  %v1434_v24 = vpop.f32.mrf.mxu0 }
 0x14c   :  { %1819 = vst.msk [vmem:[%s4181_s3 + $0x318] sm:$0xff] %vm86_vm0, %v980_v21  ;;  %1950 = vst.msk [vmem:[%s4181_s3 + $0x518] sm:$0xff] %vm86_vm0, %v1440_v22  ;;  %v975_v25 = vadd.f32 %v3513_v2, %v974_v23  ;;  %v1435_v26 = vadd.f32 %v3518_v3, %v1434_v24 }
 0x14d   :  { %v2330_v27 = vpop.f32.mrf.mxu1  ;;  %v2428_v28 = vpop.f32.mrf.mxu0 }
 0x14e   :  { %1818 = vst.msk [vmem:[%s4181_s3 + $0x310] sm:$0xff] %vm86_vm0, %v975_v25  ;;  %1949 = vst.msk [vmem:[%s4181_s3 + $0x510] sm:$0xff] %vm86_vm0, %v1435_v26  ;;  %v990_v29 = vadd.f32 %v2330_v27, %v3513_v2  ;;  %v1450_v30 = vadd.f32 %v2428_v28, %v3518_v3 }
 0x14f   :  { %v984_v31 = vpop.f32.mrf.mxu1  ;;  %v1444_v32 = vpop.f32.mrf.mxu0 }
 0x150   :  { %1821 = vst.msk [vmem:[%s4181_s3 + $0x328] sm:$0xff] %vm86_vm0, %v990_v29  ;;  %1952 = vst.msk [vmem:[%s4181_s3 + $0x528] sm:$0xff] %vm86_vm0, %v1450_v30  ;;  %v985_v33 = vadd.f32 %v3513_v2, %v984_v31  ;;  %v1445_v34 = vadd.f32 %v3518_v3, %v1444_v32 }
 0x151   :  { %v2333_v35 = vpop.f32.mrf.mxu1  ;;  %v2431_v36 = vpop.f32.mrf.mxu0 }
 0x152   :  { %1820 = vst.msk [vmem:[%s4181_s3 + $0x320] sm:$0xff] %vm86_vm0, %v985_v33  ;;  %1951 = vst.msk [vmem:[%s4181_s3 + $0x520] sm:$0xff] %vm86_vm0, %v1445_v34  ;;  %v1000_v37 = vadd.f32 %v2333_v35, %v3513_v2  ;;  %v1460_v38 = vadd.f32 %v2431_v36, %v3518_v3 }
 0x153   :  { %v994_v39 = vpop.f32.mrf.mxu1  ;;  %v1454_v40 = vpop.f32.mrf.mxu0 }
 0x154   :  { %1823 = vst.msk [vmem:[%s4181_s3 + $0x338] sm:$0xff] %vm86_vm0, %v1000_v37  ;;  %1954 = vst.msk [vmem:[%s4181_s3 + $0x538] sm:$0xff] %vm86_vm0, %v1460_v38  ;;  %v995_v41 = vadd.f32 %v3513_v2, %v994_v39  ;;  %v1455_v42 = vadd.f32 %v3518_v3, %v1454_v40 }
 0x155   :  { %v2336_v43 = vpop.f32.mrf.mxu1  ;;  %v2434_v44 = vpop.f32.mrf.mxu0 }
 0x156   :  { %1822 = vst.msk [vmem:[%s4181_s3 + $0x330] sm:$0xff] %vm86_vm0, %v995_v41  ;;  %1953 = vst.msk [vmem:[%s4181_s3 + $0x530] sm:$0xff] %vm86_vm0, %v1455_v42  ;;  %v1010_v45 = vadd.f32 %v2336_v43, %v3513_v2  ;;  %v1470_v46 = vadd.f32 %v2434_v44, %v3518_v3 }
 0x157   :  { %v1004_v47 = vpop.f32.mrf.mxu1  ;;  %v1464_v48 = vpop.f32.mrf.mxu0 }
 0x158   :  { %1825 = vst.msk [vmem:[%s4181_s3 + $0x348] sm:$0xff] %vm86_vm0, %v1010_v45  ;;  %1956 = vst.msk [vmem:[%s4181_s3 + $0x548] sm:$0xff] %vm86_vm0, %v1470_v46  ;;  %v1005_v49 = vadd.f32 %v3513_v2, %v1004_v47  ;;  %v1465_v50 = vadd.f32 %v3518_v3, %v1464_v48 }
 0x159   :  { %v2339_v51 = vpop.f32.mrf.mxu1  ;;  %v2437_v52 = vpop.f32.mrf.mxu0 }
 0x15a   :  { %1824 = vst.msk [vmem:[%s4181_s3 + $0x340] sm:$0xff] %vm86_vm0, %v1005_v49  ;;  %1955 = vst.msk [vmem:[%s4181_s3 + $0x540] sm:$0xff] %vm86_vm0, %v1465_v50  ;;  %v1020_v53 = vadd.f32 %v2339_v51, %v3513_v2  ;;  %v1480_v54 = vadd.f32 %v2437_v52, %v3518_v3 }
 0x15b   :  { %v1014_v55 = vpop.f32.mrf.mxu1  ;;  %v1474_v56 = vpop.f32.mrf.mxu0 }
 0x15c   :  { %1827 = vst.msk [vmem:[%s4181_s3 + $0x358] sm:$0xff] %vm86_vm0, %v1020_v53  ;;  %1958 = vst.msk [vmem:[%s4181_s3 + $0x558] sm:$0xff] %vm86_vm0, %v1480_v54  ;;  %v1015_v57 = vadd.f32 %v3513_v2, %v1014_v55  ;;  %v1475_v58 = vadd.f32 %v3518_v3, %v1474_v56 }
 0x15d   :  { %v2342_v59 = vpop.f32.mrf.mxu1  ;;  %v2440_v60 = vpop.f32.mrf.mxu0 }
 0x15e   :  { %1826 = vst.msk [vmem:[%s4181_s3 + $0x350] sm:$0xff] %vm86_vm0, %v1015_v57  ;;  %1957 = vst.msk [vmem:[%s4181_s3 + $0x550] sm:$0xff] %vm86_vm0, %v1475_v58  ;;  %v1030_v61 = vadd.f32 %v2342_v59, %v3513_v2  ;;  %v1490_v62 = vadd.f32 %v2440_v60, %v3518_v3 }
 0x15f   :  { %v1024_v63 = vpop.f32.mrf.mxu1  ;;  %v1484_v0 = vpop.f32.mrf.mxu0 }
 0x160   :  { %1829 = vst.msk [vmem:[%s4181_s3 + $0x368] sm:$0xff] %vm86_vm0, %v1030_v61  ;;  %1960 = vst.msk [vmem:[%s4181_s3 + $0x568] sm:$0xff] %vm86_vm0, %v1490_v62  ;;  %v1025_v5 = vadd.f32 %v3513_v2, %v1024_v63  ;;  %v1485_v6 = vadd.f32 %v3518_v3, %v1484_v0 }
 0x161   :  { %v2345_v4 = vpop.f32.mrf.mxu1  ;;  %v2443_v7 = vpop.f32.mrf.mxu0 }
 0x162   :  { %1828 = vst.msk [vmem:[%s4181_s3 + $0x360] sm:$0xff] %vm86_vm0, %v1025_v5  ;;  %1959 = vst.msk [vmem:[%s4181_s3 + $0x560] sm:$0xff] %vm86_vm0, %v1485_v6  ;;  %v1040_v8 = vadd.f32 %v2345_v4, %v3513_v2  ;;  %v1500_v9 = vadd.f32 %v2443_v7, %v3518_v3 }
 0x163   :  { %v1034_v10 = vpop.f32.mrf.mxu1  ;;  %v1494_v11 = vpop.f32.mrf.mxu0 }
 0x164   :  { %1831 = vst.msk [vmem:[%s4181_s3 + $0x378] sm:$0xff] %vm86_vm0, %v1040_v8  ;;  %1962 = vst.msk [vmem:[%s4181_s3 + $0x578] sm:$0xff] %vm86_vm0, %v1500_v9  ;;  %v1035_v12 = vadd.f32 %v3513_v2, %v1034_v10  ;;  %v1495_v13 = vadd.f32 %v3518_v3, %v1494_v11 }
 0x165   :  { %v2348_v1 = vpop.f32.mrf.mxu1  ;;  %v2446_v14 = vpop.f32.mrf.mxu0 }
 0x166   :  { %1830 = vst.msk [vmem:[%s4181_s3 + $0x370] sm:$0xff] %vm86_vm0, %v1035_v12  ;;  %1961 = vst.msk [vmem:[%s4181_s3 + $0x570] sm:$0xff] %vm86_vm0, %v1495_v13  ;;  %v1050_v15 = vadd.f32 %v2348_v1, %v3513_v2  ;;  %v1510_v16 = vadd.f32 %v2446_v14, %v3518_v3 }
 0x167   :  { %v1044_v17 = vpop.f32.mrf.mxu1  ;;  %v1504_v18 = vpop.f32.mrf.mxu0 }
 0x168   :  { %1833 = vst.msk [vmem:[%s4181_s3 + $0x388] sm:$0xff] %vm86_vm0, %v1050_v15  ;;  %1964 = vst.msk [vmem:[%s4181_s3 + $0x588] sm:$0xff] %vm86_vm0, %v1510_v16  ;;  %v1045_v19 = vadd.f32 %v3513_v2, %v1044_v17  ;;  %v1505_v20 = vadd.f32 %v3518_v3, %v1504_v18 }
 0x169   :  { %v2351_v21 = vpop.f32.mrf.mxu1  ;;  %v2449_v22 = vpop.f32.mrf.mxu0 }
 0x16a   :  { %1832 = vst.msk [vmem:[%s4181_s3 + $0x380] sm:$0xff] %vm86_vm0, %v1045_v19  ;;  %1963 = vst.msk [vmem:[%s4181_s3 + $0x580] sm:$0xff] %vm86_vm0, %v1505_v20  ;;  %v1060_v23 = vadd.f32 %v2351_v21, %v3513_v2  ;;  %v1520_v24 = vadd.f32 %v2449_v22, %v3518_v3 }
 0x16b   :  { %v1054_v25 = vpop.f32.mrf.mxu1  ;;  %v1514_v26 = vpop.f32.mrf.mxu0 }
 0x16c   :  { %1835 = vst.msk [vmem:[%s4181_s3 + $0x398] sm:$0xff] %vm86_vm0, %v1060_v23  ;;  %1966 = vst.msk [vmem:[%s4181_s3 + $0x598] sm:$0xff] %vm86_vm0, %v1520_v24  ;;  %v1055_v27 = vadd.f32 %v3513_v2, %v1054_v25  ;;  %v1515_v28 = vadd.f32 %v3518_v3, %v1514_v26 }
 0x16d   :  { %v2354_v29 = vpop.f32.mrf.mxu1  ;;  %v2452_v30 = vpop.f32.mrf.mxu0 }
 0x16e   :  { %1834 = vst.msk [vmem:[%s4181_s3 + $0x390] sm:$0xff] %vm86_vm0, %v1055_v27  ;;  %1965 = vst.msk [vmem:[%s4181_s3 + $0x590] sm:$0xff] %vm86_vm0, %v1515_v28  ;;  %v1070_v31 = vadd.f32 %v2354_v29, %v3513_v2  ;;  %v1530_v32 = vadd.f32 %v2452_v30, %v3518_v3 }
 0x16f   :  { %v1064_v33 = vpop.f32.mrf.mxu1  ;;  %v1524_v34 = vpop.f32.mrf.mxu0 }
 0x170   :  { %1837 = vst.msk [vmem:[%s4181_s3 + $0x3a8] sm:$0xff] %vm86_vm0, %v1070_v31  ;;  %1968 = vst.msk [vmem:[%s4181_s3 + $0x5a8] sm:$0xff] %vm86_vm0, %v1530_v32  ;;  %v1065_v35 = vadd.f32 %v3513_v2, %v1064_v33  ;;  %v1525_v36 = vadd.f32 %v3518_v3, %v1524_v34 }
 0x171   :  { %v2357_v37 = vpop.f32.mrf.mxu1  ;;  %v2455_v38 = vpop.f32.mrf.mxu0 }
 0x172   :  { %1836 = vst.msk [vmem:[%s4181_s3 + $0x3a0] sm:$0xff] %vm86_vm0, %v1065_v35  ;;  %1967 = vst.msk [vmem:[%s4181_s3 + $0x5a0] sm:$0xff] %vm86_vm0, %v1525_v36  ;;  %v1080_v39 = vadd.f32 %v2357_v37, %v3513_v2  ;;  %v1540_v40 = vadd.f32 %v2455_v38, %v3518_v3 }
 0x173   :  { %v1074_v41 = vpop.f32.mrf.mxu1  ;;  %v1534_v42 = vpop.f32.mrf.mxu0 }
 0x174   :  { %1839 = vst.msk [vmem:[%s4181_s3 + $0x3b8] sm:$0xff] %vm86_vm0, %v1080_v39  ;;  %1970 = vst.msk [vmem:[%s4181_s3 + $0x5b8] sm:$0xff] %vm86_vm0, %v1540_v40  ;;  %v1075_v43 = vadd.f32 %v3513_v2, %v1074_v41  ;;  %v1535_v44 = vadd.f32 %v3518_v3, %v1534_v42 }
 0x175   :  { %v2360_v45 = vpop.f32.mrf.mxu1  ;;  %v2458_v46 = vpop.f32.mrf.mxu0 }
 0x176   :  { %1838 = vst.msk [vmem:[%s4181_s3 + $0x3b0] sm:$0xff] %vm86_vm0, %v1075_v43  ;;  %1969 = vst.msk [vmem:[%s4181_s3 + $0x5b0] sm:$0xff] %vm86_vm0, %v1535_v44  ;;  %v1090_v47 = vadd.f32 %v2360_v45, %v3513_v2  ;;  %v1550_v48 = vadd.f32 %v2458_v46, %v3518_v3 }
 0x177   :  { %v1084_v49 = vpop.f32.mrf.mxu1  ;;  %v1544_v50 = vpop.f32.mrf.mxu0 }
 0x178   :  { %1841 = vst.msk [vmem:[%s4181_s3 + $0x3c8] sm:$0xff] %vm86_vm0, %v1090_v47  ;;  %1972 = vst.msk [vmem:[%s4181_s3 + $0x5c8] sm:$0xff] %vm86_vm0, %v1550_v48  ;;  %v1085_v51 = vadd.f32 %v3513_v2, %v1084_v49  ;;  %v1545_v52 = vadd.f32 %v3518_v3, %v1544_v50 }
 0x179   :  { %v2363_v53 = vpop.f32.mrf.mxu1  ;;  %v2461_v54 = vpop.f32.mrf.mxu0 }
 0x17a   :  { %1840 = vst.msk [vmem:[%s4181_s3 + $0x3c0] sm:$0xff] %vm86_vm0, %v1085_v51  ;;  %1971 = vst.msk [vmem:[%s4181_s3 + $0x5c0] sm:$0xff] %vm86_vm0, %v1545_v52  ;;  %v1100_v55 = vadd.f32 %v2363_v53, %v3513_v2  ;;  %v1560_v56 = vadd.f32 %v2461_v54, %v3518_v3 }
 0x17b   :  { %v1094_v57 = vpop.f32.mrf.mxu1  ;;  %v1554_v58 = vpop.f32.mrf.mxu0 }
 0x17c   :  { %1843 = vst.msk [vmem:[%s4181_s3 + $0x3d8] sm:$0xff] %vm86_vm0, %v1100_v55  ;;  %1974 = vst.msk [vmem:[%s4181_s3 + $0x5d8] sm:$0xff] %vm86_vm0, %v1560_v56  ;;  %v1095_v59 = vadd.f32 %v3513_v2, %v1094_v57  ;;  %v1555_v60 = vadd.f32 %v3518_v3, %v1554_v58 }
 0x17d   :  { %v2366_v61 = vpop.f32.mrf.mxu1  ;;  %v2464_v62 = vpop.f32.mrf.mxu0 }
 0x17e   :  { %1842 = vst.msk [vmem:[%s4181_s3 + $0x3d0] sm:$0xff] %vm86_vm0, %v1095_v59  ;;  %1973 = vst.msk [vmem:[%s4181_s3 + $0x5d0] sm:$0xff] %vm86_vm0, %v1555_v60  ;;  %v1110_v63 = vadd.f32 %v2366_v61, %v3513_v2  ;;  %v1570_v0 = vadd.f32 %v2464_v62, %v3518_v3 }
 0x17f   :  { %v1104_v5 = vpop.f32.mrf.mxu1  ;;  %v1564_v6 = vpop.f32.mrf.mxu0 }
 0x180   :  { %1845 = vst.msk [vmem:[%s4181_s3 + $0x3e8] sm:$0xff] %vm86_vm0, %v1110_v63  ;;  %1976 = vst.msk [vmem:[%s4181_s3 + $0x5e8] sm:$0xff] %vm86_vm0, %v1570_v0  ;;  %v1105_v4 = vadd.f32 %v3513_v2, %v1104_v5  ;;  %v1565_v7 = vadd.f32 %v3518_v3, %v1564_v6 }
 0x181   :  { %v2369_v8 = vpop.f32.mrf.mxu1  ;;  %v2467_v9 = vpop.f32.mrf.mxu0 }
 0x182   :  { %1844 = vst.msk [vmem:[%s4181_s3 + $0x3e0] sm:$0xff] %vm86_vm0, %v1105_v4  ;;  %1975 = vst.msk [vmem:[%s4181_s3 + $0x5e0] sm:$0xff] %vm86_vm0, %v1565_v7  ;;  %v1120_v10 = vadd.f32 %v2369_v8, %v3513_v2  ;;  %v1580_v11 = vadd.f32 %v2467_v9, %v3518_v3 }
 0x183   :  { %v1114_v12 = vpop.f32.mrf.mxu1  ;;  %v1574_v13 = vpop.f32.mrf.mxu0 }
 0x184   :  { %1847 = vst.msk [vmem:[%s4181_s3 + $0x3f8] sm:$0xff] %vm86_vm0, %v1120_v10  ;;  %1978 = vst.msk [vmem:[%s4181_s3 + $0x5f8] sm:$0xff] %vm86_vm0, %v1580_v11  ;;  %v1115_v1 = vadd.f32 %v3513_v2, %v1114_v12  ;;  %v1575_v14 = vadd.f32 %v3518_v3, %v1574_v13 }
 0x186   :  { %1846 = vst.msk [vmem:[%s4181_s3 + $0x3f0] sm:$0xff] %vm86_vm0, %v1115_v1  ;;  %1977 = vst.msk [vmem:[%s4181_s3 + $0x5f0] sm:$0xff] %vm86_vm0, %v1575_v14 }

</bundles_post_ra>
